<compile_context>
chip_gen: v6e
topology: v6e:2x2x1
jax: 0.10.0
libtpu: 0.0.40
codegen_flags: <defaults>
</compile_context>

<pallas_src>
import functools

import jax
import jax.numpy as jnp
from jax import lax
from jax.experimental import pallas as pl
from jax.experimental.pallas import tpu as pltpu


def _roll_lanes(x, shift):
    """jnp.roll-style cyclic lane rotation on the XLU: result[.., p] = x[.., (p-shift)%n]."""
    n = x.shape[-1]
    s = shift % n
    if s == 0:
        return x
    return pltpu.roll(x, s, 1)


def _stack_taps(x, W, mask_l, mask_r, mask_top, mask_bot):
    """Build the (9*C_in, HW) bf16 operand holding all 9 shifted 3x3 taps of x.

    Row block t (t = 3*(dy+1) + (dx+1)) holds shifted_t[p] = x[p + dy*W + dx],
    zero outside the image.  dx masking is applied once per dx group; the dy rolls
    are multiples of W (column-preserving) so only the wrapped row needs masking.
    """
    cols = {}
    for dx, cmask in ((-1, mask_l), (0, None), (1, mask_r)):
        xdx = _roll_lanes(x, -dx)                 # xdx[p] = x[p + dx] (cyclic)
        if cmask is not None:
            xdx = xdx * cmask                     # kill the column that crossed a row / wrapped
        up = _roll_lanes(xdx, W) * mask_top       # dy = -1: xdx[p - W], first row zeroed
        down = _roll_lanes(xdx, -W) * mask_bot    # dy = +1: xdx[p + W], last  row zeroed
        cols[dx] = (up, xdx, down)                # dy order: -1, 0, +1
    ordered = []
    for dyi in range(3):                          # dy = -1, 0, +1   (tap-major order)
        for dx in (-1, 0, 1):
            ordered.append(cols[dx][dyi].astype(jnp.bfloat16))
    return jnp.concatenate(ordered, axis=0)       # (9*C, HW) bf16, aligned 32-row chunks


def _rcab_kernel(x_ref, w1_ref, b1_ref, w2_ref, b2_ref,
                 wdt_ref, bd_ref, wu_ref, bu_ref, o_ref, *, W):
    f32 = jnp.float32
    x = x_ref[0].astype(f32)                      # (C, HW), lane-dense HW
    _, HW = x.shape

    # Boundary masks, hoisted once and reused by both convs.
    pos = lax.broadcasted_iota(jnp.int32, (1, HW), 1)
    col = pos % W
    mask_l = (col >= 1).astype(f32)               # dx = -1: kill column 0
    mask_r = (col <= W - 2).astype(f32)           # dx = +1: kill column W-1
    mask_top = (pos >= W).astype(f32)             # dy = -1: kill wrapped first row
    mask_bot = (pos < HW - W).astype(f32)         # dy = +1: kill wrapped last row

    # conv3x3 -> ReLU -> conv3x3, each as ONE K=9*C bf16 MXU matmul (f32 accumulate).
    taps1 = _stack_taps(x, W, mask_l, mask_r, mask_top, mask_bot)
    h = jnp.dot(w1_ref[...], taps1, preferred_element_type=f32) + b1_ref[...]
    h = jnp.maximum(h, 0.0)
    taps2 = _stack_taps(h, W, mask_l, mask_r, mask_top, mask_bot)
    h = jnp.dot(w2_ref[...], taps2, preferred_element_type=f32) + b2_ref[...]

    # ---- channel attention (squeeze-excite): VPU/XLU only, no tiny MXU matmuls ----
    pooled = jnp.sum(h, axis=1, keepdims=True) * (1.0 / HW)           # (C, 1) lane reduce
    d = jnp.sum(wdt_ref[...] * pooled, axis=0, keepdims=True)         # (1, Cr)
    d = jnp.maximum(d + bd_ref[...], 0.0)
    s = jnp.sum(wu_ref[...] * d, axis=1, keepdims=True) + bu_ref[...]  # (C, 1)
    scale = jax.nn.sigmoid(s)

    # Rescale (per-channel lane broadcast) + residual add; x is re-read from VMEM so
    # no f32 copy of it stays live across the conv body.
    o_ref[0] = (x_ref[0].astype(f32) + h * scale).astype(o_ref.dtype)


def rcab(x_nchw, conv1_w, conv1_b, conv2_w, conv2_b, du1_w, du1_b, du2_w, du2_b):
    """RCAB forward.

    Args:
      x_nchw : (N, C, H, W)
      conv1_w, conv2_w : (C, C, 3, 3)   PyTorch OIHW conv weights
      conv1_b, conv2_b : (C,)
      du1_w : (Cr, C)   first 1x1 conv of conv_du (squeezed)
      du1_b : (Cr,)
      du2_w : (C, Cr)   second 1x1 conv of conv_du (squeezed)
      du2_b : (C,)
    """
    N, C, H, W = x_nchw.shape
    HW = H * W
    Cr = du1_w.shape[0]
    f32, bf16 = jnp.float32, jnp.bfloat16

    # TODO(synk): if H*W is not a multiple of 128, pad the flattened spatial axis here
    # (and fix the pooling divisor) so stores stay lane-dense; demo shapes are aligned.
    x = x_nchw.reshape(N, C, HW)                                   # free view, no transpose

    def slab(w):   # OIHW (C_out, C_in, 3, 3) -> (C_out, 9*C_in), tap-major columns
        return jnp.transpose(w, (0, 2, 3, 1)).reshape(C, 9 * C)

    w1_slab = slab(conv1_w).astype(bf16)
    w2_slab = slab(conv2_w).astype(bf16)
    b1 = conv1_b.reshape(C, 1).astype(f32)
    b2 = conv2_b.reshape(C, 1).astype(f32)
    wd_t = jnp.transpose(du1_w).astype(f32)                        # (C, Cr)
    bd = du1_b.reshape(1, Cr).astype(f32)
    wu = du2_w.astype(f32)                                         # (C, Cr)
    bu = du2_b.reshape(C, 1).astype(f32)

    # VMEM budget scaled to the per-image live set (in/out double-buffered blocks,
    # stacked bf16 taps, f32 intermediates, weight slabs); capped for 128 MiB parts.
    itemsize = jnp.dtype(x_nchw.dtype).itemsize
    per_step = (4 * C * HW * itemsize
                + 9 * C * HW * 2
                + 4 * C * HW * 4
                + 2 * 9 * C * C * 2)
    vmem_limit = int(min(100 * 1024 * 1024, max(32 * 1024 * 1024, 4 * per_step)))

    kernel = functools.partial(_rcab_kernel, W=W)

    out = pl.pallas_call(
        kernel,
        out_shape=jax.ShapeDtypeStruct((N, C, HW), x_nchw.dtype),
        grid_spec=pltpu.PrefetchScalarGridSpec(
            num_scalar_prefetch=0,
            grid=(N,),
            in_specs=[
                pl.BlockSpec((1, C, HW), lambda n: (n, 0, 0)),     # x
                pl.BlockSpec((C, 9 * C), lambda n: (0, 0)),        # conv1 weight slab (bf16)
                pl.BlockSpec((C, 1), lambda n: (0, 0)),            # conv1 bias
                pl.BlockSpec((C, 9 * C), lambda n: (0, 0)),        # conv2 weight slab (bf16)
                pl.BlockSpec((C, 1), lambda n: (0, 0)),            # conv2 bias
                pl.BlockSpec((C, Cr), lambda n: (0, 0)),           # Wd^T
                pl.BlockSpec((1, Cr), lambda n: (0, 0)),           # bd
                pl.BlockSpec((C, Cr), lambda n: (0, 0)),           # Wu
                pl.BlockSpec((C, 1), lambda n: (0, 0)),            # bu
            ],
            out_specs=pl.BlockSpec((1, C, HW), lambda n: (n, 0, 0)),
        ),
        compiler_params=pltpu.CompilerParams(
            dimension_semantics=("parallel",),                     # batch axis -> megacore
            vmem_limit_bytes=vmem_limit,
        ),
    )(x, w1_slab, b1, w2_slab, b2, wd_t, bd, wu, bu)

    return out.reshape(N, C, H, W)


def _reference(x, conv1_w, conv1_b, conv2_w, conv2_b, du1_w, du1_b, du2_w, du2_b):
    """Pure-JAX reference of the PyTorch RCAB forward (NCHW, f32)."""
    dn = ("NCHW", "OIHW", "NCHW")
    h = lax.conv_general_dilated(x, conv1_w, (1, 1), ((1, 1), (1, 1)),
                                 dimension_numbers=dn) + conv1_b[None, :, None, None]
    h = jnp.maximum(h, 0.0)
    h = lax.conv_general_dilated(h, conv2_w, (1, 1), ((1, 1), (1, 1)),
                                 dimension_numbers=dn) + conv2_b[None, :, None, None]
    pooled = jnp.mean(h, axis=(2, 3))                              # (N, C)
    d = jnp.maximum(pooled @ du1_w.T + du1_b, 0.0)                 # (N, Cr)
    s = jax.nn.sigmoid(d @ du2_w.T + du2_b)                        # (N, C)
    return x + h * s[:, :, None, None]


if __name__ == "__main__":
    # Small, deterministic setup consistent with RCAB(n_feat=32, kernel_size=3, reduction=8).
    N, C, H, W = 2, 32, 16, 16
    reduction = 8
    Cr = C // reduction

    key = jax.random.PRNGKey(0)
    ks = jax.random.split(key, 9)

    x = jax.random.normal(ks[0], (N, C, H, W), dtype=jnp.float32)
    conv1_w = jax.random.normal(ks[1], (C, C, 3, 3), dtype=jnp.float32) * 0.1
    conv1_b = jax.random.normal(ks[2], (C,), dtype=jnp.float32) * 0.1
    conv2_w = jax.random.normal(ks[3], (C, C, 3, 3), dtype=jnp.float32) * 0.1
    conv2_b = jax.random.normal(ks[4], (C,), dtype=jnp.float32) * 0.1
    du1_w = jax.random.normal(ks[5], (Cr, C), dtype=jnp.float32) * 0.1
    du1_b = jax.random.normal(ks[6], (Cr,), dtype=jnp.float32) * 0.1
    du2_w = jax.random.normal(ks[7], (C, Cr), dtype=jnp.float32) * 0.1
    du2_b = jax.random.normal(ks[8], (C,), dtype=jnp.float32) * 0.1

    out = jax.block_until_ready(
        rcab(x, conv1_w, conv1_b, conv2_w, conv2_b, du1_w, du1_b, du2_w, du2_b))
    ref = jax.block_until_ready(
        _reference(x, conv1_w, conv1_b, conv2_w, conv2_b, du1_w, du1_b, du2_w, du2_b))

    assert out.shape == (N, C, H, W)
    # Tolerance relaxed vs the pure-f32 version: conv operands are fed to the MXU in bf16.
    max_err = float(jnp.max(jnp.abs(out - ref)))
    assert jnp.allclose(out, ref, atol=5e-2, rtol=5e-2), (
        "mismatch vs reference: max abs err = %g" % max_err)
    print("KERNEL_OK")
</pallas_src>

<mosaic_0001>
module attributes {stable_mosaic.version = 11 : i64} {
  func.func @_rcab_kernel(%arg0: i32, %arg1: memref<1x32x256xf32, #tpu.memory_space<vmem>>, %arg2: memref<32x288xbf16, #tpu.memory_space<vmem>>, %arg3: memref<32x1xf32, #tpu.memory_space<vmem>>, %arg4: memref<32x288xbf16, #tpu.memory_space<vmem>>, %arg5: memref<32x1xf32, #tpu.memory_space<vmem>>, %arg6: memref<32x4xf32, #tpu.memory_space<vmem>>, %arg7: memref<1x4xf32, #tpu.memory_space<vmem>>, %arg8: memref<32x4xf32, #tpu.memory_space<vmem>>, %arg9: memref<32x1xf32, #tpu.memory_space<vmem>>, %arg10: memref<1x32x256xf32, #tpu.memory_space<vmem>>) attributes {dimension_semantics = [#tpu.dimension_semantics<parallel>], iteration_bounds = array<i64: 2>, scalar_prefetch = 0 : i64, scratch_operands = 0 : i64, tpu.core_type = #tpu.core_type<tc>, window_params = [{transform_indices = @transform_0, window_bounds = array<i64: 1, 32, 256>}, {pipeline_mode = #tpu.pipeline_mode<synchronous>, transform_indices = @transform_1, window_bounds = array<i64: 32, 288>}, {pipeline_mode = #tpu.pipeline_mode<synchronous>, transform_indices = @transform_2, window_bounds = array<i64: 32, 1>}, {pipeline_mode = #tpu.pipeline_mode<synchronous>, transform_indices = @transform_3, window_bounds = array<i64: 32, 288>}, {pipeline_mode = #tpu.pipeline_mode<synchronous>, transform_indices = @transform_4, window_bounds = array<i64: 32, 1>}, {pipeline_mode = #tpu.pipeline_mode<synchronous>, transform_indices = @transform_5, window_bounds = array<i64: 32, 4>}, {pipeline_mode = #tpu.pipeline_mode<synchronous>, transform_indices = @transform_6, window_bounds = array<i64: 1, 4>}, {pipeline_mode = #tpu.pipeline_mode<synchronous>, transform_indices = @transform_7, window_bounds = array<i64: 32, 4>}, {pipeline_mode = #tpu.pipeline_mode<synchronous>, transform_indices = @transform_8, window_bounds = array<i64: 32, 1>}, {transform_indices = @transform_9, window_bounds = array<i64: 1, 32, 256>}]} {
    %c0 = arith.constant 0 : index
    %c0_0 = arith.constant 0 : index
    %c0_1 = arith.constant 0 : index
    %0 = vector.load %arg1[%c0, %c0_0, %c0_1] : memref<1x32x256xf32, #tpu.memory_space<vmem>>, vector<1x32x256xf32>
    %1 = vector.shape_cast %0 : vector<1x32x256xf32> to vector<32x256xf32>
    %2 = tpu.iota {dimensions = array<i32: 1>} : vector<1x256xi32>
    %c16_i32 = arith.constant 16 : i32
    %c0_i32 = arith.constant 0 : i32
    %3 = arith.cmpi eq, %c16_i32, %c0_i32 : i32
    %c1_i32 = arith.constant 1 : i32
    %4 = arith.select %3, %c1_i32, %c16_i32 : i32
    %5 = vector.broadcast %4 : i32 to vector<1x256xi32>
    %6 = arith.remsi %2, %5 : vector<1x256xi32>
    %c0_i32_2 = arith.constant 0 : i32
    %7 = vector.broadcast %c0_i32_2 : i32 to vector<1x256xi32>
    %8 = arith.cmpi ne, %6, %7 : vector<1x256xi32>
    %c0_i32_3 = arith.constant 0 : i32
    %9 = vector.broadcast %c0_i32_3 : i32 to vector<1x256xi32>
    %10 = arith.cmpi slt, %6, %9 : vector<1x256xi32>
    %c0_i32_4 = arith.constant 0 : i32
    %11 = arith.cmpi slt, %4, %c0_i32_4 : i32
    %12 = vector.broadcast %11 : i1 to vector<1x256xi1>
    %13 = vector.broadcast %12 : vector<1x256xi1> to vector<1x256xi1>
    %14 = arith.xori %10, %13 : vector<1x256xi1>
    %15 = arith.andi %14, %8 : vector<1x256xi1>
    %16 = vector.broadcast %4 : i32 to vector<1x256xi32>
    %17 = arith.addi %6, %16 : vector<1x256xi32>
    %18 = arith.select %15, %17, %6 : vector<1x256xi1>, vector<1x256xi32>
    %c1_i32_5 = arith.constant 1 : i32
    %19 = vector.broadcast %c1_i32_5 : i32 to vector<1x256xi32>
    %20 = arith.cmpi sge, %18, %19 : vector<1x256xi32>
    %21 = arith.extui %20 : vector<1x256xi1> to vector<1x256xi32>
    %22 = arith.sitofp %21 : vector<1x256xi32> to vector<1x256xf32>
    %c14_i32 = arith.constant 14 : i32
    %23 = vector.broadcast %c14_i32 : i32 to vector<1x256xi32>
    %24 = arith.cmpi sle, %18, %23 : vector<1x256xi32>
    %25 = arith.extui %24 : vector<1x256xi1> to vector<1x256xi32>
    %26 = arith.sitofp %25 : vector<1x256xi32> to vector<1x256xf32>
    %c16_i32_6 = arith.constant 16 : i32
    %27 = vector.broadcast %c16_i32_6 : i32 to vector<1x256xi32>
    %28 = arith.cmpi sge, %2, %27 : vector<1x256xi32>
    %29 = arith.extui %28 : vector<1x256xi1> to vector<1x256xi32>
    %30 = arith.sitofp %29 : vector<1x256xi32> to vector<1x256xf32>
    %c240_i32 = arith.constant 240 : i32
    %31 = vector.broadcast %c240_i32 : i32 to vector<1x256xi32>
    %32 = arith.cmpi slt, %2, %31 : vector<1x256xi32>
    %33 = arith.extui %32 : vector<1x256xi1> to vector<1x256xi32>
    %34 = arith.sitofp %33 : vector<1x256xi32> to vector<1x256xf32>
    %c1_i32_7 = arith.constant 1 : i32
    %35 = tpu.dynamic_rotate %1 by %c1_i32_7 dim 1 : vector<32x256xf32>, i32 -> vector<32x256xf32>
    %36 = vector.broadcast %22 : vector<1x256xf32> to vector<32x256xf32>
    %37 = arith.mulf %35, %36 : vector<32x256xf32>
    %c16_i32_8 = arith.constant 16 : i32
    %38 = tpu.dynamic_rotate %37 by %c16_i32_8 dim 1 : vector<32x256xf32>, i32 -> vector<32x256xf32>
    %39 = vector.broadcast %30 : vector<1x256xf32> to vector<32x256xf32>
    %40 = arith.mulf %38, %39 : vector<32x256xf32>
    %c240_i32_9 = arith.constant 240 : i32
    %41 = tpu.dynamic_rotate %37 by %c240_i32_9 dim 1 : vector<32x256xf32>, i32 -> vector<32x256xf32>
    %42 = vector.broadcast %34 : vector<1x256xf32> to vector<32x256xf32>
    %43 = arith.mulf %41, %42 : vector<32x256xf32>
    %c16_i32_10 = arith.constant 16 : i32
    %44 = tpu.dynamic_rotate %1 by %c16_i32_10 dim 1 : vector<32x256xf32>, i32 -> vector<32x256xf32>
    %45 = vector.broadcast %30 : vector<1x256xf32> to vector<32x256xf32>
    %46 = arith.mulf %44, %45 : vector<32x256xf32>
    %c240_i32_11 = arith.constant 240 : i32
    %47 = tpu.dynamic_rotate %1 by %c240_i32_11 dim 1 : vector<32x256xf32>, i32 -> vector<32x256xf32>
    %48 = vector.broadcast %34 : vector<1x256xf32> to vector<32x256xf32>
    %49 = arith.mulf %47, %48 : vector<32x256xf32>
    %c255_i32 = arith.constant 255 : i32
    %50 = tpu.dynamic_rotate %1 by %c255_i32 dim 1 : vector<32x256xf32>, i32 -> vector<32x256xf32>
    %51 = vector.broadcast %26 : vector<1x256xf32> to vector<32x256xf32>
    %52 = arith.mulf %50, %51 : vector<32x256xf32>
    %c16_i32_12 = arith.constant 16 : i32
    %53 = tpu.dynamic_rotate %52 by %c16_i32_12 dim 1 : vector<32x256xf32>, i32 -> vector<32x256xf32>
    %54 = vector.broadcast %30 : vector<1x256xf32> to vector<32x256xf32>
    %55 = arith.mulf %53, %54 : vector<32x256xf32>
    %c240_i32_13 = arith.constant 240 : i32
    %56 = tpu.dynamic_rotate %52 by %c240_i32_13 dim 1 : vector<32x256xf32>, i32 -> vector<32x256xf32>
    %57 = vector.broadcast %34 : vector<1x256xf32> to vector<32x256xf32>
    %58 = arith.mulf %56, %57 : vector<32x256xf32>
    %59 = arith.truncf %40 : vector<32x256xf32> to vector<32x256xbf16>
    %60 = arith.truncf %46 : vector<32x256xf32> to vector<32x256xbf16>
    %61 = arith.truncf %55 : vector<32x256xf32> to vector<32x256xbf16>
    %62 = arith.truncf %37 : vector<32x256xf32> to vector<32x256xbf16>
    %63 = arith.truncf %1 : vector<32x256xf32> to vector<32x256xbf16>
    %64 = arith.truncf %52 : vector<32x256xf32> to vector<32x256xbf16>
    %65 = arith.truncf %43 : vector<32x256xf32> to vector<32x256xbf16>
    %66 = arith.truncf %49 : vector<32x256xf32> to vector<32x256xbf16>
    %67 = arith.truncf %58 : vector<32x256xf32> to vector<32x256xbf16>
    %68 = tpu.concatenate %59, %60, %61, %62, %63, %64, %65, %66, %67 in 0 : vector<32x256xbf16>, vector<32x256xbf16>, vector<32x256xbf16>, vector<32x256xbf16>, vector<32x256xbf16>, vector<32x256xbf16>, vector<32x256xbf16>, vector<32x256xbf16>, vector<32x256xbf16> -> vector<288x256xbf16>
    %c0_14 = arith.constant 0 : index
    %c0_15 = arith.constant 0 : index
    %69 = vector.load %arg2[%c0_14, %c0_15] : memref<32x288xbf16, #tpu.memory_space<vmem>>, vector<32x288xbf16>
    %cst = arith.constant dense<0.000000e+00> : vector<32x256xf32>
    %70 = tpu.matmul %69, %68, %cst {dimension_numbers = #tpu.dot_dimension_numbers<[1], [0], [0], [1], [0, 0, 1, 1], [], []>} : vector<32x288xbf16>, vector<288x256xbf16>, vector<32x256xf32> -> vector<32x256xf32>
    %c0_16 = arith.constant 0 : index
    %c0_17 = arith.constant 0 : index
    %71 = vector.load %arg3[%c0_16, %c0_17] : memref<32x1xf32, #tpu.memory_space<vmem>>, vector<32x1xf32>
    %72 = vector.broadcast %71 : vector<32x1xf32> to vector<32x256xf32>
    %73 = arith.addf %70, %72 : vector<32x256xf32>
    %cst_18 = arith.constant 0.000000e+00 : f32
    %74 = vector.broadcast %cst_18 : f32 to vector<32x256xf32>
    %75 = arith.maximumf %73, %74 : vector<32x256xf32>
    %c1_i32_19 = arith.constant 1 : i32
    %76 = tpu.dynamic_rotate %75 by %c1_i32_19 dim 1 : vector<32x256xf32>, i32 -> vector<32x256xf32>
    %77 = vector.broadcast %22 : vector<1x256xf32> to vector<32x256xf32>
    %78 = arith.mulf %76, %77 : vector<32x256xf32>
    %c16_i32_20 = arith.constant 16 : i32
    %79 = tpu.dynamic_rotate %78 by %c16_i32_20 dim 1 : vector<32x256xf32>, i32 -> vector<32x256xf32>
    %80 = vector.broadcast %30 : vector<1x256xf32> to vector<32x256xf32>
    %81 = arith.mulf %79, %80 : vector<32x256xf32>
    %c240_i32_21 = arith.constant 240 : i32
    %82 = tpu.dynamic_rotate %78 by %c240_i32_21 dim 1 : vector<32x256xf32>, i32 -> vector<32x256xf32>
    %83 = vector.broadcast %34 : vector<1x256xf32> to vector<32x256xf32>
    %84 = arith.mulf %82, %83 : vector<32x256xf32>
    %c16_i32_22 = arith.constant 16 : i32
    %85 = tpu.dynamic_rotate %75 by %c16_i32_22 dim 1 : vector<32x256xf32>, i32 -> vector<32x256xf32>
    %86 = vector.broadcast %30 : vector<1x256xf32> to vector<32x256xf32>
    %87 = arith.mulf %85, %86 : vector<32x256xf32>
    %c240_i32_23 = arith.constant 240 : i32
    %88 = tpu.dynamic_rotate %75 by %c240_i32_23 dim 1 : vector<32x256xf32>, i32 -> vector<32x256xf32>
    %89 = vector.broadcast %34 : vector<1x256xf32> to vector<32x256xf32>
    %90 = arith.mulf %88, %89 : vector<32x256xf32>
    %c255_i32_24 = arith.constant 255 : i32
    %91 = tpu.dynamic_rotate %75 by %c255_i32_24 dim 1 : vector<32x256xf32>, i32 -> vector<32x256xf32>
    %92 = vector.broadcast %26 : vector<1x256xf32> to vector<32x256xf32>
    %93 = arith.mulf %91, %92 : vector<32x256xf32>
    %c16_i32_25 = arith.constant 16 : i32
    %94 = tpu.dynamic_rotate %93 by %c16_i32_25 dim 1 : vector<32x256xf32>, i32 -> vector<32x256xf32>
    %95 = vector.broadcast %30 : vector<1x256xf32> to vector<32x256xf32>
    %96 = arith.mulf %94, %95 : vector<32x256xf32>
    %c240_i32_26 = arith.constant 240 : i32
    %97 = tpu.dynamic_rotate %93 by %c240_i32_26 dim 1 : vector<32x256xf32>, i32 -> vector<32x256xf32>
    %98 = vector.broadcast %34 : vector<1x256xf32> to vector<32x256xf32>
    %99 = arith.mulf %97, %98 : vector<32x256xf32>
    %100 = arith.truncf %81 : vector<32x256xf32> to vector<32x256xbf16>
    %101 = arith.truncf %87 : vector<32x256xf32> to vector<32x256xbf16>
    %102 = arith.truncf %96 : vector<32x256xf32> to vector<32x256xbf16>
    %103 = arith.truncf %78 : vector<32x256xf32> to vector<32x256xbf16>
    %104 = arith.truncf %75 : vector<32x256xf32> to vector<32x256xbf16>
    %105 = arith.truncf %93 : vector<32x256xf32> to vector<32x256xbf16>
    %106 = arith.truncf %84 : vector<32x256xf32> to vector<32x256xbf16>
    %107 = arith.truncf %90 : vector<32x256xf32> to vector<32x256xbf16>
    %108 = arith.truncf %99 : vector<32x256xf32> to vector<32x256xbf16>
    %109 = tpu.concatenate %100, %101, %102, %103, %104, %105, %106, %107, %108 in 0 : vector<32x256xbf16>, vector<32x256xbf16>, vector<32x256xbf16>, vector<32x256xbf16>, vector<32x256xbf16>, vector<32x256xbf16>, vector<32x256xbf16>, vector<32x256xbf16>, vector<32x256xbf16> -> vector<288x256xbf16>
    %c0_27 = arith.constant 0 : index
    %c0_28 = arith.constant 0 : index
    %110 = vector.load %arg4[%c0_27, %c0_28] : memref<32x288xbf16, #tpu.memory_space<vmem>>, vector<32x288xbf16>
    %cst_29 = arith.constant dense<0.000000e+00> : vector<32x256xf32>
    %111 = tpu.matmul %110, %109, %cst_29 {dimension_numbers = #tpu.dot_dimension_numbers<[1], [0], [0], [1], [0, 0, 1, 1], [], []>} : vector<32x288xbf16>, vector<288x256xbf16>, vector<32x256xf32> -> vector<32x256xf32>
    %c0_30 = arith.constant 0 : index
    %c0_31 = arith.constant 0 : index
    %112 = vector.load %arg5[%c0_30, %c0_31] : memref<32x1xf32, #tpu.memory_space<vmem>>, vector<32x1xf32>
    %113 = vector.broadcast %112 : vector<32x1xf32> to vector<32x256xf32>
    %114 = arith.addf %111, %113 : vector<32x256xf32>
    %cst_32 = arith.constant dense<0.000000e+00> : vector<32xf32>
    %115 = vector.multi_reduction <add>, %114, %cst_32 [1] : vector<32x256xf32> to vector<32xf32>
    %116 = vector.shape_cast %115 : vector<32xf32> to vector<32x1xf32>
    %cst_33 = arith.constant 3.906250e-03 : f32
    %117 = vector.broadcast %cst_33 : f32 to vector<32x1xf32>
    %118 = arith.mulf %116, %117 : vector<32x1xf32>
    %c0_34 = arith.constant 0 : index
    %c0_35 = arith.constant 0 : index
    %119 = vector.load %arg6[%c0_34, %c0_35] : memref<32x4xf32, #tpu.memory_space<vmem>>, vector<32x4xf32>
    %120 = vector.broadcast %118 : vector<32x1xf32> to vector<32x4xf32>
    %121 = arith.mulf %119, %120 : vector<32x4xf32>
    %cst_36 = arith.constant dense<0.000000e+00> : vector<4xf32>
    %122 = vector.multi_reduction <add>, %121, %cst_36 [0] : vector<32x4xf32> to vector<4xf32>
    %123 = vector.shape_cast %122 : vector<4xf32> to vector<1x4xf32>
    %c0_37 = arith.constant 0 : index
    %c0_38 = arith.constant 0 : index
    %124 = vector.load %arg7[%c0_37, %c0_38] : memref<1x4xf32, #tpu.memory_space<vmem>>, vector<1x4xf32>
    %125 = arith.addf %123, %124 : vector<1x4xf32>
    %cst_39 = arith.constant 0.000000e+00 : f32
    %126 = vector.broadcast %cst_39 : f32 to vector<1x4xf32>
    %127 = arith.maximumf %125, %126 : vector<1x4xf32>
    %c0_40 = arith.constant 0 : index
    %c0_41 = arith.constant 0 : index
    %128 = vector.load %arg8[%c0_40, %c0_41] : memref<32x4xf32, #tpu.memory_space<vmem>>, vector<32x4xf32>
    %129 = vector.broadcast %127 : vector<1x4xf32> to vector<32x4xf32>
    %130 = arith.mulf %128, %129 : vector<32x4xf32>
    %cst_42 = arith.constant dense<0.000000e+00> : vector<32xf32>
    %131 = vector.multi_reduction <add>, %130, %cst_42 [1] : vector<32x4xf32> to vector<32xf32>
    %132 = vector.shape_cast %131 : vector<32xf32> to vector<32x1xf32>
    %c0_43 = arith.constant 0 : index
    %c0_44 = arith.constant 0 : index
    %133 = vector.load %arg9[%c0_43, %c0_44] : memref<32x1xf32, #tpu.memory_space<vmem>>, vector<32x1xf32>
    %134 = arith.addf %132, %133 : vector<32x1xf32>
    %135 = arith.negf %134 : vector<32x1xf32>
    %136 = math.exp %135 : vector<32x1xf32>
    %cst_45 = arith.constant 1.000000e+00 : f32
    %137 = vector.broadcast %cst_45 : f32 to vector<32x1xf32>
    %138 = arith.addf %137, %136 : vector<32x1xf32>
    %139 = arith.divf %137, %138 : vector<32x1xf32>
    %c0_46 = arith.constant 0 : index
    %c0_47 = arith.constant 0 : index
    %c0_48 = arith.constant 0 : index
    %140 = vector.load %arg1[%c0_46, %c0_47, %c0_48] : memref<1x32x256xf32, #tpu.memory_space<vmem>>, vector<1x32x256xf32>
    %141 = vector.shape_cast %140 : vector<1x32x256xf32> to vector<32x256xf32>
    %142 = vector.broadcast %139 : vector<32x1xf32> to vector<32x256xf32>
    %143 = arith.mulf %114, %142 : vector<32x256xf32>
    %144 = arith.addf %141, %143 : vector<32x256xf32>
    %c0_49 = arith.constant 0 : index
    %c0_50 = arith.constant 0 : index
    %c0_51 = arith.constant 0 : index
    %145 = vector.load %arg10[%c0_49, %c0_50, %c0_51] : memref<1x32x256xf32, #tpu.memory_space<vmem>>, vector<1x32x256xf32>
    %146 = vector.shape_cast %145 : vector<1x32x256xf32> to vector<32x256xf32>
    %147 = vector.shape_cast %144 : vector<32x256xf32> to vector<1x32x256xf32>
    tpu.vector_store %arg10[%c0_49, %c0_50, %c0_51], %147 {strides = array<i32>} : memref<1x32x256xf32, #tpu.memory_space<vmem>>, vector<1x32x256xf32>,
    return
  }
  func.func @transform_0(%arg0: i32) -> (i32, i32, i32) {
    %c0_i32 = arith.constant 0 : i32
    %c0_i32_0 = arith.constant 0 : i32
    %c0_i32_1 = arith.constant 0 : i32
    return %arg0, %c0_i32, %c0_i32_0 : i32, i32, i32
  }
  func.func @transform_1(%arg0: i32) -> (i32, i32) {
    %c0_i32 = arith.constant 0 : i32
    %c0_i32_0 = arith.constant 0 : i32
    %c0_i32_1 = arith.constant 0 : i32
    return %c0_i32, %c0_i32_0 : i32, i32
  }
  func.func @transform_2(%arg0: i32) -> (i32, i32) {
    %c0_i32 = arith.constant 0 : i32
    %c0_i32_0 = arith.constant 0 : i32
    %c0_i32_1 = arith.constant 0 : i32
    return %c0_i32, %c0_i32_0 : i32, i32
  }
  func.func @transform_3(%arg0: i32) -> (i32, i32) {
    %c0_i32 = arith.constant 0 : i32
    %c0_i32_0 = arith.constant 0 : i32
    %c0_i32_1 = arith.constant 0 : i32
    return %c0_i32, %c0_i32_0 : i32, i32
  }
  func.func @transform_4(%arg0: i32) -> (i32, i32) {
    %c0_i32 = arith.constant 0 : i32
    %c0_i32_0 = arith.constant 0 : i32
    %c0_i32_1 = arith.constant 0 : i32
    return %c0_i32, %c0_i32_0 : i32, i32
  }
  func.func @transform_5(%arg0: i32) -> (i32, i32) {
    %c0_i32 = arith.constant 0 : i32
    %c0_i32_0 = arith.constant 0 : i32
    %c0_i32_1 = arith.constant 0 : i32
    return %c0_i32, %c0_i32_0 : i32, i32
  }
  func.func @transform_6(%arg0: i32) -> (i32, i32) {
    %c0_i32 = arith.constant 0 : i32
    %c0_i32_0 = arith.constant 0 : i32
    %c0_i32_1 = arith.constant 0 : i32
    return %c0_i32, %c0_i32_0 : i32, i32
  }
  func.func @transform_7(%arg0: i32) -> (i32, i32) {
    %c0_i32 = arith.constant 0 : i32
    %c0_i32_0 = arith.constant 0 : i32
    %c0_i32_1 = arith.constant 0 : i32
    return %c0_i32, %c0_i32_0 : i32, i32
  }
  func.func @transform_8(%arg0: i32) -> (i32, i32) {
    %c0_i32 = arith.constant 0 : i32
    %c0_i32_0 = arith.constant 0 : i32
    %c0_i32_1 = arith.constant 0 : i32
    return %c0_i32, %c0_i32_0 : i32, i32
  }
  func.func @transform_9(%arg0: i32) -> (i32, i32, i32) {
    %c0_i32 = arith.constant 0 : i32
    %c0_i32_0 = arith.constant 0 : i32
    %c0_i32_1 = arith.constant 0 : i32
    return %arg0, %c0_i32, %c0_i32_0 : i32, i32, i32
  }
}

</mosaic_0001>

<bundles_post_ra>
// kernel: tpu_custom_call.1
= control target key start
LH: loop header
LB: loop body
LE: loop exit
PB: predicated region body
PF: predicated region fallthrough
CT: control target
= control target key end

     0   :  { %14 = vsyncpa [#allocation3], 0  ;;  %s2988_s0 = inlined_call_operand.vmem [shape: f32[2,32,256], index: 0, kind: input, shape index: {}]   ;;  %s2989_s1 = inlined_call_operand.hbm [shape: bf16[32,288], index: 1, kind: input, shape index: {}]   ;;  %s2990_s2 = inlined_call_operand.vmem [shape: f32[32,1], index: 2, kind: input, shape index: {}]   ;;  %s2991_s3 = inlined_call_operand.vmem [shape: bf16[32,288], index: 3, kind: input, shape index: {}]   ;;  %s2992_s4 = inlined_call_operand.vmem [shape: f32[32,1], index: 4, kind: input, shape index: {}]   ;;  %s2993_s5 = inlined_call_operand.vmem [shape: f32[32,4], index: 5, kind: input, shape index: {}]   ;;  %s2994_s6 = inlined_call_operand.hbm [shape: f32[1,4], index: 6, kind: input, shape index: {}]   ;;  %s2995_s7 = inlined_call_operand.vmem [shape: f32[32,4], index: 7, kind: input, shape index: {}]   ;;  %s2996_s8 = inlined_call_operand.vmem [shape: f32[32,1], index: 8, kind: input, shape index: {}]   ;;  %s2997_s9 = inlined_call_operand.hbm [shape: f32[2,32,256], index: 9, kind: output, shape index: {}]  }
   0x1   :  { %15 = vsyncpa [#allocation6], 0 }
   0x2   :  { %16 = vsyncpa [#allocation4], 0 }
   0x3   :  { %18 = vsyncpa [#allocation4 + $0x1], 0  ;;  %s1942_s30 = smov 0   ;;  %s1944_s10 = smov 0  }
   0x4   :  { %s1946_s11 = smov 0   ;;  %s1948_s12 = smov 0  }
   0x5 LB: > { %s1963_s13 = sadd.s32 4294967295, %s1878_s12   ;;  %s1603_s14 = sadd.s32 4294967294, %s1878_s12   ;;  %s1878_s12 = sphi %s1948_s12, %s3013_s12   ;;  %s1874_s11 = sphi %s1946_s11, %s3012_s11   ;;  %s1870_s10 = sphi %s1944_s10, %s3011_s10   ;;  %s1866_s30 = sphi %s1942_s30, %s3010_s30  }
   0x6   : > { %s1967_s15 = sadd.s32 1, %s1878_s12   ;;  %s225_s16 = sadd.s32 1, %s1874_s11 }
   0x7   : > { %s222_s17 = ssub.s32 %s1878_s12, %s1967_s15  ;;  %p235_p0 = scmp.ne.s32.totalorder %s1874_s11, %s1870_s10 }
   0x8   : > { %p223_p1 = scmp.eq.s32.totalorder %s222_s17, 0  ;;  %p236_p2 = scmp.eq.s32.totalorder %s1963_s13, 1 }
   0x9   : > { %p241_p3 = scmp.ne.s32.totalorder %s1870_s10, %s1866_s30  ;;  %p242_p4 = scmp.eq.s32.totalorder %s1603_s14, 1 }
   0xa   : > { %s1978_s18 = scalar_select %p223_p1, %s1874_s11, %s225_s16  }
   0xb   : > { %p1980_p5 = por %p236_p2, %p235_p0  ;;  %p1984_p6 = por %p242_p4, %p241_p3 }
   0xc   : > { %p1604_p7 = scmp.ge.s32.totalorder %s1878_s12, 1  ;;  %p249_p8 = scmp.lt.s32.totalorder %s1878_s12, 3 }
   0xd   : > { %p2998_p9 = scmp.eq.s32.totalorder %s1963_s13, 0  ;;  %s1880_s22 = smov [#allocation2]  }
   0xe   : > { %p1991_p10 = pnand %p1604_p7, %p249_p8  ;;  %s261_s23 = sshll.u32 %s1880_s22, 4  ;;  %s262_s23 = int_to_ptr.vmem [resolvable:$true] %s261_s23 }
   0xf   : > { %s1881_s25 = smov [#allocation5]   ;;  %s1769_s27 = scalar_lea.vmem %s262_s23, 768 }
  0x10   : > { %p1657_p11 = pneg %p1991_p10  ;;  %s287_s26 = sshll.u32 %s1881_s25, 4  ;;  %s288_s26 = int_to_ptr.vmem [resolvable:$true] %s287_s26 }
  0x11   : > { %p1770_p0 = scmp.ne.s32.totalorder %s262_s23, %s1769_s27  ;;  %p1777_p3 = scmp.lt.s32.totalorder %s262_s23, %s262_s23 }
  0x12   : > { %p1999_p12 = pnand %p2998_p9, %p1657_p11  ;;  %p1778_p4 = scmp.lt.s32.totalorder %s1769_s27, %s1769_s27 }
  0x14   : > { %p1760_p13 = pneg %p1999_p12  ;;  %p1779_p7 = por %p1778_p4, %p1777_p3 }
  0x16   : > { %p1772_p1 = pnand %p1770_p0, %p1760_p13 }
  0x18   : > { %p1773_p2 = pneg %p1772_p1 }
  0x1a   : > { %p1780_p8 = pnand %p1779_p7, %p1773_p2 }
  0x1c   : > { %1783 = shalt.err (!%p1780_p8)
}
  0x1d   : > { %s1882_s28 = smov 192   ;;  %s1883_s29 = smov 12  }
  0x1e   : > { %1660 = dma.hbm_to_vmem [thread:$0]  (!%p1999_p12), %s2989_s1, 768, %s262_s23, [#allocation3], %s1882_s28, %s1882_s28, %s1883_s29  }
  0x1f   : > { %s1795_s17 = scalar_lea.vmem %s288_s26, 16  ;;  %s1802_s22 = scalar_lea.vmem %s288_s26, 32 }
  0x20   : > { %p1796_p11 = scmp.ne.s32.totalorder %s288_s26, %s1795_s17  ;;  %p1803_p9 = scmp.lt.s32.totalorder %s288_s26, %s288_s26 }
  0x21   : > { %p1804_p3 = scmp.lt.s32.totalorder %s1802_s22, %s1795_s17 }
  0x22   : > { %p1798_p0 = pnand %p1796_p11, %p1760_p13 }
  0x23   : > { %p1805_p2 = por %p1804_p3, %p1803_p9 }
  0x24   : > { %p1799_p1 = pneg %p1798_p0 }
  0x26   : > { %p1806_p4 = pnand %p1805_p2, %p1799_p1 }
  0x28   : > { %1809 = shalt.err (!%p1806_p4)
}
  0x29   : > { %1663 = dma.hbm_to_vmem [thread:$0]  (!%p1999_p12), %s2994_s6, 16, %s288_s26, [#allocation6]  }
  0x2a   : > { %314 = sbr.rel (%p1991_p10) target bundleno = 1598 (0x63e), region = 56  ;;  %p3005_p7 = scmp.eq.s32.totalorder (!%p1991_p10), %s1963_s13, 0 }
  0x2f   : > { %1853 = dma.done.wait (%p3005_p7), [#allocation3], 768   ;;  %p3006_p13 = pmov %p3005_p7 }
  0x30   : > { %p3007_p8 = pmov %p3005_p7 }
  0x31   : > { %1855 = vsyncadd (%p3006_p13), [#allocation3], 4294966528 }
  0x32   : > { %1857 = dma.done.wait (%p3007_p8), [#allocation6], 16   ;;  %p3008_p9 = pmov %p3005_p7 }
  0x33   : > { %p354_p11 = scmp.lt.s32.totalorder %s1963_s13, 1  ;;  %v368_v0 = vlaneseq  ;;  %v1884_v2 = vmov 0.0   ;;  %s1885_s29 = smov 127   ;;  %vm777_vm10 = vcmask 261120   ;;  %vm1388_vm11 = vcmask 31744  }
  0x34   : > { %1859 = vsyncadd (%p3008_p9), [#allocation6], 4294967280  ;;  %s1886_s14 = smov 1   ;;  %s2999_s16 = smov 16  }
  0x35   : > { %s355_s23 = scalar_select %p354_p11, %s1963_s13, 1  ;;  %v2034_v1 = vand.u32 127, %v368_v0 }
  0x36   : > { %s1888_s17 = smov 112   ;;  %s351_s27 = sand.u32 1, %s1870_s10  }
  0x37   : > { %s1645_s21 = sshll.u32 %s355_s23, 6  ;;  %vm407_vm0 = vcmp.ge.s32.totalorder %v2034_v1, 16  ;;  %v2046_v4 = vadd.s32 128, %v2034_v1  ;;  %v375_v14 = vand.u32 15, %v2034_v1  ;;  %vm598_vm3 = vcmp.lt.s32.totalorder %v2034_v1, 127  ;;  %s1611_s23 = sshll.u32 %s351_s27, 6 }
  0x38   : > { %s2040_s28 = scalar_lea.vmem %s2988_s0, %s1645_s21  ;;  %v2043_v3 = vsel %vm407_vm0, 1.0, %v1884_v2  ;;  %vm435_vm7 = vcmp.lt.s32.totalorder %v2034_v1, 1  ;;  %vm468_vm8 = vcmp.lt.s32.totalorder %v2034_v1, 16  ;;  %vm501_vm9 = vcmp.lt.s32.totalorder %v2034_v1, 112  ;;  %v1726_v1 = vld [vmem:[%s2991_s3] ss:$12 sps:$4 sm:$0xff]  }
  0x39   : > { %v2049_v5 = vld [vmem:[%s2040_s28 + $0x28] sm:$0xff]  ;;  %v2052_v6 = vld [vmem:[%s2040_s28 + $0x20] sm:$0xff]  ;;  %vm414_vm1 = vcmp.lt.s32.totalorder %v2046_v4, 240  ;;  %v2063_v8 = vld [vmem:[%s2040_s28 + $0x38] sm:$0xff]  ;;  %vm401_vm2 = vcmp.le.s32.totalorder %v375_v14, 14  ;;  %v382_v15 = vand.u32 15, %v2046_v4 }
  0x3a   : > { %594 = vrot.lane.b32.xlu1 %v2049_v5, %s1885_s29  ;;  %586 = vrot.lane.b32.xlu0 %v2052_v6, %s1885_s29  ;;  %v2060_v7 = vsel %vm414_vm1, 1.0, %v1884_v2  ;;  %v2066_v9 = vld [vmem:[%s2040_s28 + $0x30] sm:$0xff]  ;;  %v2072_v11 = vld [vmem:[%s2040_s28] sm:$0xff]  ;;  %v2144_v16 = vsel %vm401_vm2, 1.0, %v1884_v2  ;;  %vm395_vm5 = vcmp.ge.s32.totalorder %v375_v14, 1  ;;  %s1646_s21 = sshll.u32 %s1963_s13, 10 }
  0x3b   : > { %v2069_v10 = vld [vmem:[%s2040_s28 + $0x10] sm:$0xff]  ;;  %v2083_v12 = vld [vmem:[%s2040_s28 + $0x18] sm:$0xff]  ;;  %v2086_v13 = vld [vmem:[%s2040_s28 + $0x8] sm:$0xff]  ;;  %vm402_vm4 = vcmp.le.s32.totalorder %v382_v15, 14  ;;  %vm396_vm6 = vcmp.ge.s32.totalorder %v382_v15, 1  ;;  %v2211_v48 = vsel %vm395_vm5, 1.0, %v1884_v2 }
  0x3c   : > { %v2154_v22 = vsel %vm402_vm4, 1.0, %v1884_v2  ;;  %v2214_v49 = vsel %vm396_vm6, 1.0, %v1884_v2  ;;  %s353_s24 = scalar_lea.vmem [#allocation7], %s1611_s23  ;;  %s1890_s25 = smov [#allocation7]  }
  0x3d   : > { %s1519_s26 = sshll.u32 %s353_s24, 4  ;;  %s2943_s26 = int_to_ptr.vmem [resolvable:$true] %s1519_s26 }
  0x3e   : > { %596 = vrot.lane.b32.xlu1 %v2063_v8, %s1885_s29  ;;  %588 = vrot.lane.b32.xlu0 %v2066_v9, %s1885_s29  ;;  %s1810_s22 = scalar_lea.vmem %s2943_s26, 1024 }
  0x3f   : > { %p1811_p10 = scmp.ne.s32.totalorder %s2943_s26, %s1810_s22 }
  0x41   : > { %p1812_p12 = pnand %p1811_p10, %p1980_p5 }
  0x42   : > { %584 = vrot.lane.b32.xlu1 %v2069_v10, %s1885_s29  ;;  %582 = vrot.lane.b32.xlu0 %v2072_v11, %s1885_s29 }
  0x43   : > { %p1813_p0 = pneg %p1812_p12 }
  0x46   : > { %592 = vrot.lane.b32.xlu1 %v2083_v12, %s1885_s29  ;;  %590 = vrot.lane.b32.xlu0 %v2086_v13, %s1885_s29 }
  0x4a   : > { %425 = vrot.lane.b32.xlu1 %v2066_v9, %s1886_s14  ;;  %423 = vrot.lane.b32.xlu0 %v2052_v6, %s1886_s14 }
  0x4e   : > { %433 = vrot.lane.b32.xlu1 %v2063_v8, %s1886_s14  ;;  %431 = vrot.lane.b32.xlu0 %v2049_v5, %s1886_s14 }
  0x52   : > { %421 = vrot.lane.b32.xlu1 %v2069_v10, %s1886_s14  ;;  %419 = vrot.lane.b32.xlu0 %v2072_v11, %s1886_s14 }
  0x56   : > { %429 = vrot.lane.b32.xlu1 %v2083_v12, %s1886_s14  ;;  %427 = vrot.lane.b32.xlu0 %v2086_v13, %s1886_s14 }
  0x5a   : > { %524 = vrot.lane.b32.xlu1 %v2066_v9, %s2999_s16  ;;  %522 = vrot.lane.b32.xlu0 %v2052_v6, %s2999_s16 }
  0x5e   : > { %532 = vrot.lane.b32.xlu1 %v2063_v8, %s2999_s16  ;;  %530 = vrot.lane.b32.xlu0 %v2049_v5, %s2999_s16 }
  0x62   : > { %520 = vrot.lane.b32.xlu1 %v2069_v10, %s2999_s16  ;;  %518 = vrot.lane.b32.xlu0 %v2072_v11, %s2999_s16 }
  0x66   : > { %528 = vrot.lane.b32.xlu1 %v2083_v12, %s2999_s16  ;;  %526 = vrot.lane.b32.xlu0 %v2086_v13, %s2999_s16 }
  0x6a   : > { %556 = vrot.lane.b32.xlu1 %v2066_v9, %s1888_s17  ;;  %554 = vrot.lane.b32.xlu0 %v2052_v6, %s1888_s17 }
  0x6e   : > { %564 = vrot.lane.b32.xlu1 %v2063_v8, %s1888_s17  ;;  %562 = vrot.lane.b32.xlu0 %v2049_v5, %s1888_s17 }
  0x72   : > { %552 = vrot.lane.b32.xlu1 %v2069_v10, %s1888_s17  ;;  %550 = vrot.lane.b32.xlu0 %v2072_v11, %s1888_s17 }
  0x76   : > { %560 = vrot.lane.b32.xlu1 %v2083_v12, %s1888_s17  ;;  %558 = vrot.lane.b32.xlu0 %v2086_v13, %s1888_s17 }
  0xac   : > { %v595_v17 = vpop.permute.xlu1 %594  ;;  %v587_v18 = vpop.permute.xlu0 %586 }
  0xad   : > { %v601_v19 = vsel %vm598_vm3, %v587_v18, %v595_v17  ;;  %v605_v21 = vsel %vm598_vm3, %v595_v17, %v587_v18 }
  0xae   : > { %v2149_v20 = vmul.f32 %v2144_v16, %v601_v19  ;;  %v2166_v28 = vmul.f32 %v2154_v22, %v605_v21 }
  0xb0   : > { %v597_v23 = vpop.permute.xlu1 %596  ;;  %v589_v24 = vpop.permute.xlu0 %588  ;;  %619 = vrot.lane.b32.xlu0 %v2149_v20, %s2999_s16 }
  0xb1   : > { %v602_v25 = vsel %vm598_vm3, %v589_v24, %v597_v23  ;;  %v606_v26 = vsel %vm598_vm3, %v597_v23, %v589_v24 }
  0xb2   : > { %v2163_v27 = vmul.f32 %v2144_v16, %v602_v25  ;;  %v2169_v29 = vmul.f32 %v2154_v22, %v606_v26 }
  0xb4   : > { %621 = vrot.lane.b32.xlu1 %v2163_v27, %s2999_s16  ;;  %v585_v30 = vpop.permute.xlu1 %584  ;;  %627 = vrot.lane.b32.xlu0 %v2166_v28, %s2999_s16  ;;  %v583_v31 = vpop.permute.xlu0 %582  ;;  %v702_v32 = vpack.c.bf16 %v2169_v29, %v2166_v28  ;;  %v701_v33 = vpack.c.bf16 %v2163_v27, %v2149_v20 }
  0xb8   : > { %629 = vrot.lane.b32.xlu1 %v2169_v29, %s2999_s16  ;;  %v593_v34 = vpop.permute.xlu1 %592  ;;  %v591_v35 = vpop.permute.xlu0 %590 }
  0xb9   : > { %v600_v36 = vsel %vm598_vm3, %v585_v30, %v593_v34  ;;  %v604_v37 = vsel %vm598_vm3, %v593_v34, %v585_v30  ;;  %v599_v38 = vsel %vm598_vm3, %v583_v31, %v591_v35  ;;  %v603_v39 = vsel %vm598_vm3, %v591_v35, %v583_v31  ;;  %v1720_v30 = vld [vmem:[#allocation2 + $0x4] ss:$12 sps:$4 sm:$0xff]   ;;  %v726_v35 = vld [vmem:[%s2990_s2 + $0x18] sm:$0xff] }
  0xba   : > { %v2190_v40 = vmul.f32 %v2144_v16, %v600_v36  ;;  %v2193_v41 = vmul.f32 %v2144_v16, %v599_v38  ;;  %v2196_v42 = vmul.f32 %v2154_v22, %v604_v37  ;;  %v2199_v43 = vmul.f32 %v2154_v22, %v603_v39  ;;  %816 = vmatprep.mubr.bf16.mxu0 %v1720_v30  ;;  %v725_v36 = vld [vmem:[%s2990_s2 + $0x10] sm:$0xff]  ;;  %v723_v37 = vld [vmem:[%s2990_s2] sm:$0xff]  ;;  %v724_v38 = vld [vmem:[%s2990_s2 + $0x8] sm:$0xff] }
  0xbb   : > { %v1889_v31 = vmov 0  }
  0xbc   : > { %617 = vrot.lane.b32.xlu1 %v2190_v40, %s2999_s16  ;;  %v426_v44 = vpop.permute.xlu1 %425  ;;  %615 = vrot.lane.b32.xlu0 %v2193_v41, %s2999_s16  ;;  %v424_v45 = vpop.permute.xlu0 %423  ;;  %v700_v46 = vpack.c.bf16 %v2196_v42, %v2199_v43  ;;  %v699_v47 = vpack.c.bf16 %v2190_v40, %v2193_v41 }
  0xbd   : > { %869 = vmatprep.mubr.bf16.mxu1 %v1889_v31  ;;  %1717 = vset.pattern.permute.xlu1 %v1889_v31 }
  0xbe   : > { %1716 = vset.pattern.permute.xlu0 %v1889_v31 }
  0xc0   : > { %625 = vrot.lane.b32.xlu1 %v2196_v42, %s2999_s16  ;;  %v434_v50 = vpop.permute.xlu1 %433  ;;  %623 = vrot.lane.b32.xlu0 %v2199_v43, %s2999_s16  ;;  %v432_v51 = vpop.permute.xlu0 %431 }
  0xc1   : > { %v439_v52 = vsel %vm435_vm7, %v426_v44, %v434_v50  ;;  %v443_v53 = vsel %vm435_vm7, %v434_v50, %v426_v44  ;;  %v438_v54 = vsel %vm435_vm7, %v424_v45, %v432_v51  ;;  %v442_v55 = vsel %vm435_vm7, %v432_v51, %v424_v45 }
  0xc2   : > { %v450_v56 = vmul.f32 %v2211_v48, %v443_v53  ;;  %v448_v57 = vmul.f32 %v2211_v48, %v442_v55  ;;  %v449_v58 = vmul.f32 %v2214_v49, %v438_v54  ;;  %v451_v59 = vmul.f32 %v2214_v49, %v439_v52 }
  0xc4   : > { %458 = vrot.lane.b32.xlu1 %v450_v56, %s2999_s16  ;;  %v422_v60 = vpop.permute.xlu1 %421  ;;  %456 = vrot.lane.b32.xlu0 %v448_v57, %s2999_s16  ;;  %v420_v61 = vpop.permute.xlu0 %419  ;;  %v694_v62 = vpack.c.bf16 %v451_v59, %v449_v58  ;;  %v693_v63 = vpack.c.bf16 %v450_v56, %v448_v57 }
  0xc6   : > { %784 = vmatprep.subr.bf16.mxu0 %v694_v62 }
  0xc7   : > { %785 = vmatpush1.bf16.msra.mxu0 %v693_v63 }
  0xc8   : > { %466 = vrot.lane.b32.xlu1 %v451_v59, %s2999_s16  ;;  %v430_v2 = vpop.permute.xlu1 %429  ;;  %464 = vrot.lane.b32.xlu0 %v449_v58, %s2999_s16  ;;  %v428_v4 = vpop.permute.xlu0 %427 }
  0xc9   : > { %v437_v14 = vsel %vm435_vm7, %v422_v60, %v430_v2  ;;  %v441_v15 = vsel %vm435_vm7, %v430_v2, %v422_v60  ;;  %v436_v17 = vsel %vm435_vm7, %v420_v61, %v428_v4  ;;  %v440_v18 = vsel %vm435_vm7, %v428_v4, %v420_v61 }
  0xca   : > { %v447_v19 = vmul.f32 %v2214_v49, %v437_v14  ;;  %v445_v21 = vmul.f32 %v2214_v49, %v436_v17  ;;  %v446_v23 = vmul.f32 %v2211_v48, %v441_v15  ;;  %v444_v24 = vmul.f32 %v2211_v48, %v440_v18 }
  0xcc   : > { %454 = vrot.lane.b32.xlu1 %v446_v23, %s2999_s16  ;;  %452 = vrot.lane.b32.xlu0 %v444_v24, %s2999_s16  ;;  %v692_v25 = vpack.c.bf16 %v447_v19, %v445_v21  ;;  %v691_v26 = vpack.c.bf16 %v446_v23, %v444_v24  ;;  %v523_v34 = vpop.permute.xlu0 %522  ;;  %v525_v39 = vpop.permute.xlu1 %524 }
  0xce   : > { %786 = vmatprep.subr.bf16.mxu0 %v692_v25 }
  0xcf   : > { %787 = vmatpush1.bf16.msra.mxu0 %v691_v26 }
  0xd0   : > { %462 = vrot.lane.b32.xlu1 %v447_v19, %s2999_s16  ;;  %460 = vrot.lane.b32.xlu0 %v445_v21, %s2999_s16  ;;  %v531_v44 = vpop.permute.xlu0 %530  ;;  %v533_v45 = vpop.permute.xlu1 %532  ;;  %s2947_s16 = scalar_lea.sflag [#allocation4], %s351_s27 }
  0xd1   : > { %v537_v30 = vsel %vm468_vm8, %v525_v39, %v533_v45 }
  0xd4   : > { %491 = vrot.lane.b32.xlu1 %v450_v56, %s1888_s17  ;;  %489 = vrot.lane.b32.xlu0 %v448_v57, %s1888_s17  ;;  %v519_v50 = vpop.permute.xlu0 %518  ;;  %v521_v51 = vpop.permute.xlu1 %520 }
  0xd8   : > { %499 = vrot.lane.b32.xlu1 %v451_v59, %s1888_s17  ;;  %497 = vrot.lane.b32.xlu0 %v449_v58, %s1888_s17  ;;  %v527_v52 = vpop.permute.xlu0 %526  ;;  %v529_v53 = vpop.permute.xlu1 %528 }
  0xdc   : > { %487 = vrot.lane.b32.xlu1 %v446_v23, %s1888_s17  ;;  %485 = vrot.lane.b32.xlu0 %v444_v24, %s1888_s17  ;;  %v2291_v54 = vpop.permute.xlu0 %554  ;;  %v2293_v55 = vpop.permute.xlu1 %556 }
  0xe0   : > { %495 = vrot.lane.b32.xlu1 %v447_v19, %s1888_s17  ;;  %493 = vrot.lane.b32.xlu0 %v445_v21, %s1888_s17  ;;  %v2295_v56 = vpop.permute.xlu0 %562  ;;  %v2297_v57 = vpop.permute.xlu1 %564 }
  0xe4   : > { %653 = vrot.lane.b32.xlu1 %v2163_v27, %s1888_s17  ;;  %651 = vrot.lane.b32.xlu0 %v2149_v20, %s1888_s17  ;;  %v2299_v58 = vpop.permute.xlu0 %550  ;;  %v2301_v59 = vpop.permute.xlu1 %552  ;;  %v697_v20 = vpack.c.bf16 %v2066_v9, %v2052_v6 }
  0xe8   : > { %661 = vrot.lane.b32.xlu1 %v2169_v29, %s1888_s17  ;;  %659 = vrot.lane.b32.xlu0 %v2166_v28, %s1888_s17  ;;  %v2303_v60 = vpop.permute.xlu0 %558  ;;  %v2305_v61 = vpop.permute.xlu1 %560 }
  0xec   : > { %649 = vrot.lane.b32.xlu1 %v2190_v40, %s1888_s17  ;;  %647 = vrot.lane.b32.xlu0 %v2193_v41, %s1888_s17 }
  0xf0   : > { %657 = vrot.lane.b32.xlu1 %v2196_v42, %s1888_s17  ;;  %655 = vrot.lane.b32.xlu0 %v2199_v43, %s1888_s17  ;;  %v696_v42 = vpack.c.bf16 %v2083_v12, %v2086_v13  ;;  %v695_v12 = vpack.c.bf16 %v2069_v10, %v2072_v11 }
  0xf4   : > { %744 = vperm.xlu1 %1717, %v726_v35   ;;  %739 = vperm.xlu0 %1716, %v725_v36   ;;  %v541_v35 = vsel %vm468_vm8, %v533_v45, %v525_v39  ;;  %v540_v36 = vsel %vm468_vm8, %v531_v44, %v523_v34  ;;  %v536_v39 = vsel %vm468_vm8, %v523_v34, %v531_v44 }
  0xf5   : > { %v686_v34 = vpack.c.bf16 %v537_v30, %v536_v39  ;;  %v535_v44 = vsel %vm468_vm8, %v521_v51, %v529_v53 }
  0xf8   : > { %729 = vperm.xlu1 %1717, %v723_v37   ;;  %734 = vperm.xlu0 %1716, %v724_v38  }
 0x122   : > { %v620_v62 = vpop.permute.xlu0 %619 }
 0x126   : > { %v622_v63 = vpop.permute.xlu1 %621  ;;  %v628_v2 = vpop.permute.xlu0 %627 }
 0x127   : > { %v637_v4 = vsel %vm468_vm8, %v628_v2, %v620_v62  ;;  %v633_v15 = vsel %vm468_vm8, %v620_v62, %v628_v2 }
 0x128   : > { %v643_v19 = vmul.f32 %v2043_v3, %v637_v4 }
 0x12a   : > { %v630_v14 = vpop.permute.xlu1 %629 }
 0x12b   : > { %v634_v17 = vsel %vm468_vm8, %v622_v63, %v630_v14  ;;  %v638_v18 = vsel %vm468_vm8, %v630_v14, %v622_v63 }
 0x12c   : > { %v645_v21 = vmul.f32 %v2043_v3, %v638_v18  ;;  %v690_v23 = vpack.c.bf16 %v634_v17, %v633_v15  ;;  %v548_v17 = vmul.f32 %v2043_v3, %v541_v35  ;;  %v546_v18 = vmul.f32 %v2043_v3, %v540_v36 }
 0x12e   : > { %v618_v24 = vpop.permute.xlu1 %617  ;;  %788 = vmatprep.subr.bf16.mxu0 %v690_v23  ;;  %v616_v25 = vpop.permute.xlu0 %615  ;;  %v689_v26 = vpack.c.bf16 %v645_v21, %v643_v19 }
 0x130   : > { %789 = vmatpush1.bf16.msra.mxu0 %v689_v26  ;;  %v534_v26 = vsel %vm468_vm8, %v519_v50, %v527_v52 }
 0x132   : > { %v626_v37 = vpop.permute.xlu1 %625  ;;  %v624_v38 = vpop.permute.xlu0 %623 }
 0x133   : > { %v632_v62 = vsel %vm468_vm8, %v618_v24, %v626_v37  ;;  %v636_v63 = vsel %vm468_vm8, %v626_v37, %v618_v24  ;;  %v631_v2 = vsel %vm468_vm8, %v616_v25, %v624_v38  ;;  %v635_v4 = vsel %vm468_vm8, %v624_v38, %v616_v25 }
 0x134   : > { %v641_v45 = vmul.f32 %v2043_v3, %v636_v63  ;;  %v639_v14 = vmul.f32 %v2043_v3, %v635_v4  ;;  %v688_v15 = vpack.c.bf16 %v632_v62, %v631_v2  ;;  %v539_v24 = vsel %vm468_vm8, %v529_v53, %v521_v51 }
 0x135   : > { %v538_v25 = vsel %vm468_vm8, %v527_v52, %v519_v50  ;;  %v544_v35 = vmul.f32 %v2043_v3, %v539_v24  ;;  %v685_v62 = vpack.c.bf16 %v548_v17, %v546_v18  ;;  %v684_v2 = vpack.c.bf16 %v535_v44, %v534_v26 }
 0x136   : > { %v459_v19 = vpop.permute.xlu1 %458  ;;  %790 = vmatprep.subr.bf16.mxu0 %v688_v15  ;;  %v457_v21 = vpop.permute.xlu0 %456  ;;  %v687_v23 = vpack.c.bf16 %v641_v45, %v639_v14  ;;  %v542_v36 = vmul.f32 %v2043_v3, %v538_v25  ;;  %v573_v14 = vsel %vm501_vm9, %v2297_v57, %v2293_v55  ;;  %v572_v15 = vsel %vm501_vm9, %v2295_v56, %v2291_v54 }
 0x137   : > { %v581_v18 = vmul.f32 %v2060_v7, %v573_v14 }
 0x138   : > { %791 = vmatpush1.bf16.msra.mxu0 %v687_v23  ;;  %v683_v45 = vpack.c.bf16 %v544_v35, %v542_v36  ;;  %v570_v36 = vsel %vm501_vm9, %v2303_v60, %v2299_v58 }
 0x139   : > { %792 = vmatprep.subr.bf16.mxu0 %v686_v34 }
 0x13a   : > { %v467_v37 = vpop.permute.xlu1 %466  ;;  %v465_v38 = vpop.permute.xlu0 %464 }
 0x13b   : > { %v476_v63 = vsel %vm468_vm8, %v467_v37, %v459_v19  ;;  %v475_v30 = vsel %vm468_vm8, %v465_v38, %v457_v21  ;;  %v472_v50 = vsel %vm468_vm8, %v459_v19, %v467_v37  ;;  %v471_v51 = vsel %vm468_vm8, %v457_v21, %v465_v38 }
 0x13c   : > { %793 = vmatpush1.bf16.msra.mxu0 %v685_v62  ;;  %v483_v52 = vmul.f32 %v2043_v3, %v476_v63  ;;  %v481_v53 = vmul.f32 %v2043_v3, %v475_v30  ;;  %v682_v17 = vpack.c.bf16 %v472_v50, %v471_v51  ;;  %v579_v19 = vmul.f32 %v2060_v7, %v572_v15 }
 0x13d   : > { %794 = vmatprep.subr.bf16.mxu0 %v684_v2  ;;  %v571_v21 = vsel %vm501_vm9, %v2305_v61, %v2301_v59  ;;  %v569_v63 = vsel %vm501_vm9, %v2293_v55, %v2297_v57  ;;  %v568_v51 = vsel %vm501_vm9, %v2291_v54, %v2295_v56  ;;  %v567_v55 = vsel %vm501_vm9, %v2301_v59, %v2305_v61 }
 0x13e   : > { %v455_v4 = vpop.permute.xlu1 %454  ;;  %v453_v39 = vpop.permute.xlu0 %452  ;;  %v681_v25 = vpack.c.bf16 %v483_v52, %v481_v53  ;;  %v577_v52 = vmul.f32 %v2060_v7, %v571_v21  ;;  %v575_v53 = vmul.f32 %v2060_v7, %v570_v36  ;;  %v566_v54 = vsel %vm501_vm9, %v2299_v58, %v2303_v60 }
 0x140   : > { %795 = vmatpush1.bf16.msra.mxu0 %v683_v45  ;;  %v709_v45 = vpack.c.bf16 %v569_v63, %v568_v51  ;;  %v708_v15 = vpack.c.bf16 %v577_v52, %v575_v53 }
 0x141   : > { %796 = vmatprep.subr.bf16.mxu0 %v682_v17 }
 0x142   : > { %v463_v23 = vpop.permute.xlu1 %462  ;;  %v461_v24 = vpop.permute.xlu0 %460 }
 0x143   : > { %v470_v34 = vsel %vm468_vm8, %v455_v4, %v463_v23  ;;  %v474_v44 = vsel %vm468_vm8, %v463_v23, %v455_v4  ;;  %v469_v26 = vsel %vm468_vm8, %v453_v39, %v461_v24  ;;  %v473_v35 = vsel %vm468_vm8, %v461_v24, %v453_v39 }
 0x144   : > { %v479_v37 = vmul.f32 %v2043_v3, %v474_v44  ;;  %v477_v38 = vmul.f32 %v2043_v3, %v473_v35  ;;  %797 = vmatpush1.bf16.msra.mxu0 %v681_v25  ;;  %v680_v62 = vpack.c.bf16 %v470_v34, %v469_v26  ;;  %v710_v4 = vpack.c.bf16 %v581_v18, %v579_v19 }
 0x145   : > { %v707_v19 = vpack.c.bf16 %v567_v55, %v566_v54  ;;  %v1722_v54 = vld [vmem:[#allocation2 + $0x1c] ss:$12 sps:$4 sm:$0xff]  }
 0x146   : > { %v492_v30 = vpop.permute.xlu1 %491  ;;  %798 = vmatprep.subr.bf16.mxu0 %v680_v62  ;;  %v490_v2 = vpop.permute.xlu0 %489  ;;  %v679_v50 = vpack.c.bf16 %v479_v37, %v477_v38 }
 0x148   : > { %799 = vmatpush1.bf16.msra.mxu0 %v679_v50 }
 0x149   : > { %800 = vmatprep.subr.bf16.mxu0 %v710_v4 }
 0x14a   : > { %v500_v57 = vpop.permute.xlu1 %499  ;;  %v498_v39 = vpop.permute.xlu0 %497 }
 0x14b   : > { %v509_v56 = vsel %vm501_vm9, %v500_v57, %v492_v30  ;;  %v508_v14 = vsel %vm501_vm9, %v498_v39, %v490_v2  ;;  %v505_v58 = vsel %vm501_vm9, %v492_v30, %v500_v57  ;;  %v504_v60 = vsel %vm501_vm9, %v490_v2, %v498_v39 }
 0x14c   : > { %v517_v17 = vmul.f32 %v2060_v7, %v509_v56  ;;  %v515_v18 = vmul.f32 %v2060_v7, %v508_v14  ;;  %801 = vmatpush2.bf16.msra.mxu0 %v709_v45  ;;  %v705_v23 = vpack.c.bf16 %v505_v58, %v504_v60  ;;  %v698_v39 = vpack.c.bf16 %v2063_v8, %v2049_v5  ;;  %v1724_v56 = vld [vmem:[#allocation2 + $0x18] ss:$12 sps:$4 sm:$0xff]   ;;  %v1725_v14 = vld [vmem:[#allocation2 + $0x20] ss:$12 sps:$4 sm:$0xff]  }
 0x14d   : > { %802 = vmatprep.subr.bf16.mxu0 %v708_v15 }
 0x14e   : > { %v488_v59 = vpop.permute.xlu1 %487  ;;  %v486_v61 = vpop.permute.xlu0 %485  ;;  %v706_v21 = vpack.c.bf16 %v517_v17, %v515_v18 }
 0x150   : > { %803 = vmatpush2.bf16.msra.mxu0 %v707_v19 }
 0x151   : > { %804 = vmatprep.subr.bf16.mxu0 %v706_v21 }
 0x152   : > { %v496_v24 = vpop.permute.xlu1 %495  ;;  %v494_v25 = vpop.permute.xlu0 %493 }
 0x153   : > { %v507_v34 = vsel %vm501_vm9, %v496_v24, %v488_v59  ;;  %v506_v44 = vsel %vm501_vm9, %v494_v25, %v486_v61  ;;  %v503_v26 = vsel %vm501_vm9, %v488_v59, %v496_v24  ;;  %v502_v36 = vsel %vm501_vm9, %v486_v61, %v494_v25 }
 0x154   : > { %v513_v35 = vmul.f32 %v2060_v7, %v507_v34  ;;  %v511_v37 = vmul.f32 %v2060_v7, %v506_v44  ;;  %805 = vmatpush2.bf16.msra.mxu0 %v705_v23  ;;  %v703_v30 = vpack.c.bf16 %v503_v26, %v502_v36 }
 0x156   : > { %v654_v38 = vpop.permute.xlu1 %653  ;;  %v652_v62 = vpop.permute.xlu0 %651  ;;  %v704_v63 = vpack.c.bf16 %v513_v35, %v511_v37 }
 0x158   : > { %806 = vmatprep.subr.bf16.mxu0 %v704_v63 }
 0x159   : > { %807 = vmatpush2.bf16.msra.mxu0 %v703_v30 }
 0x15a   : > { %v662_v2 = vpop.permute.xlu1 %661  ;;  %808 = vmatprep.subr.bf16.mxu0 %v702_v32  ;;  %v660_v50 = vpop.permute.xlu0 %659 }
 0x15b   : > { %v670_v51 = vsel %vm501_vm9, %v662_v2, %v654_v38  ;;  %v669_v52 = vsel %vm501_vm9, %v660_v50, %v652_v62  ;;  %v666_v53 = vsel %vm501_vm9, %v654_v38, %v662_v2  ;;  %v665_v4 = vsel %vm501_vm9, %v652_v62, %v660_v50 }
 0x15c   : > { %v676_v55 = vmul.f32 %v2060_v7, %v669_v52  ;;  %v678_v57 = vmul.f32 %v2060_v7, %v670_v51  ;;  %v713_v45 = vpack.c.bf16 %v666_v53, %v665_v4 }
 0x15d   : > { %809 = vmatpush2.bf16.msra.mxu0 %v701_v33 }
 0x15e   : > { %v650_v28 = vpop.permute.xlu1 %649  ;;  %810 = vmatprep.subr.bf16.mxu0 %v700_v46  ;;  %v648_v29 = vpop.permute.xlu0 %647  ;;  %v714_v32 = vpack.c.bf16 %v678_v57, %v676_v55  ;;  %v1718_v46 = vld [vmem:[#allocation2] ss:$12 sps:$4 sm:$0xff]  }
 0x160   : > { %849 = vmatprep.subr.bf16.mxu1 %v714_v32 }
 0x161   : > { %811 = vmatpush2.bf16.msra.mxu0 %v699_v47  ;;  %850 = vmatpush1.bf16.msra.mxu1 %v713_v45  ;;  %v1721_v47 = vld [vmem:[#allocation2 + $0x8] ss:$12 sps:$4 sm:$0xff]  }
 0x162   : > { %v658_v27 = vpop.permute.xlu1 %657  ;;  %v656_v33 = vpop.permute.xlu0 %655  ;;  %812 = vmatprep.subr.bf16.mxu0 %v698_v39 }
 0x163   : > { %v668_v43 = vsel %vm501_vm9, %v658_v27, %v650_v28  ;;  %v667_v5 = vsel %vm501_vm9, %v656_v33, %v648_v29  ;;  %v664_v8 = vsel %vm501_vm9, %v650_v28, %v658_v27  ;;  %v663_v6 = vsel %vm501_vm9, %v648_v29, %v656_v33 }
 0x164   : > { %v674_v40 = vmul.f32 %v2060_v7, %v668_v43  ;;  %v672_v9 = vmul.f32 %v2060_v7, %v667_v5  ;;  %v711_v41 = vpack.c.bf16 %v664_v8, %v663_v6 }
 0x165   : > { %813 = vmatpush2.bf16.msra.mxu0 %v697_v20 }
 0x166   : > { %814 = vmatprep.subr.bf16.mxu0 %v696_v42  ;;  %v712_v13 = vpack.c.bf16 %v674_v40, %v672_v9 }
 0x168   : > { %851 = vmatprep.subr.bf16.mxu1 %v712_v13 }
 0x169   : > { %815 = vmatpush2.bf16.msra.mxu0 %v695_v12  ;;  %852 = vmatpush1.bf16.msra.mxu1 %v711_v41 }
 0x16c   : > { %817 = vmatmul.mubr.bf16.vlgmr.msra.gmra.mxu0 %v1718_v46  ;;  %1626 = vmatmul.mubr.msk.bf16.vlgmr.msra.gmra.mxu1 %vm777_vm10, %v1721_v47 }
 0x16d   : > { %826 = vmatprep.mubr.bf16.mxu0 %v1722_v54  ;;  %879 = vmatprep.mubr.bf16.mxu1 %v1889_v31 }
 0x16f   : > { %v745_v10 = vpop.permute.xlu1 %744  ;;  %v740_v11 = vpop.permute.xlu0 %739 }
 0x173   : > { %v730_v15 = vpop.permute.xlu1 %729  ;;  %v735_v21 = vpop.permute.xlu0 %734 }
 0x174   : > { %827 = vmatmul.mubr.bf16.gmra.mxu0 %v1724_v56  ;;  %1627 = vmatmul.mubr.msk.bf16.gmra.mxu1 %vm777_vm10, %v1725_v14 }
 0x175   : > { %1343 = vmatprep.mubr.bf16.mxu0 %v1889_v31 }
 0x22c   : > { %v871_v17 = vpop.f32.mrf.mxu1  ;;  %v818_v18 = vpop.f32.mrf.mxu0 }
 0x22d   : > { %v819_v59 = vadd.f32 %v818_v18, %v730_v15 }
 0x22e   : > { %v820_v61 = vpop.f32.mrf.mxu0  ;;  %v873_v19 = vpop.f32.mrf.mxu1 }
 0x22f   : > { %v872_v58 = vadd.f32 %v871_v17, %v819_v59  ;;  %v821_v60 = vadd.f32 %v820_v61, %v730_v15 }
 0x230   : > { %v822_v23 = vpop.f32.mrf.mxu0  ;;  %v875_v24 = vpop.f32.mrf.mxu1 }
 0x231   : > { %v2469_v25 = vmax.f32 %v872_v58, 0.0  ;;  %v874_v34 = vadd.f32 %v873_v19, %v821_v60  ;;  %v823_v44 = vadd.f32 %v822_v23, %v735_v21 }
 0x232   : > { %v824_v26 = vpop.f32.mrf.mxu0  ;;  %v877_v35 = vpop.f32.mrf.mxu1 }
 0x233   : > { %v876_v36 = vadd.f32 %v875_v24, %v823_v44  ;;  %v825_v37 = vadd.f32 %v824_v26, %v735_v21  ;;  %1058 = vrot.lane.b32.xlu1 %v2469_v25, %s1885_s29  ;;  %v2473_v63 = vmax.f32 %v874_v34, 0.0 }
 0x234   : > { %v828_v38 = vpop.f32.mrf.mxu0  ;;  %v881_v62 = vpop.f32.mrf.mxu1 }
 0x235   : > { %v2475_v30 = vmax.f32 %v876_v36, 0.0  ;;  %v878_v2 = vadd.f32 %v877_v35, %v825_v37  ;;  %v829_v50 = vadd.f32 %v828_v38, %v740_v11 }
 0x236   : > { %v830_v51 = vpop.f32.mrf.mxu0  ;;  %v883_v52 = vpop.f32.mrf.mxu1 }
 0x237   : > { %v882_v53 = vadd.f32 %v881_v62, %v829_v50  ;;  %v831_v4 = vadd.f32 %v830_v51, %v740_v11  ;;  %1060 = vrot.lane.b32.xlu0 %v2475_v30, %s1885_s29  ;;  %1066 = vrot.lane.b32.xlu1 %v2473_v63, %s1885_s29  ;;  %v2481_v28 = vmax.f32 %v878_v2, 0.0 }
 0x238   : > { %v832_v55 = vpop.f32.mrf.mxu0  ;;  %v885_v57 = vpop.f32.mrf.mxu1 }
 0x239   : > { %v2483_v29 = vmax.f32 %v882_v53, 0.0  ;;  %v884_v32 = vadd.f32 %v883_v52, %v831_v4  ;;  %v833_v39 = vadd.f32 %v832_v55, %v745_v10 }
 0x23a   : > { %v834_v45 = vpop.f32.mrf.mxu0  ;;  %v887_v33 = vpop.f32.mrf.mxu1 }
 0x23b   : > { %v886_v20 = vadd.f32 %v885_v57, %v833_v39  ;;  %v835_v27 = vadd.f32 %v834_v45, %v745_v10  ;;  %1068 = vrot.lane.b32.xlu0 %v2481_v28, %s1885_s29  ;;  %1062 = vrot.lane.b32.xlu1 %v2483_v29, %s1885_s29  ;;  %v2489_v42 = vmax.f32 %v884_v32, 0.0 }
 0x23d   : > { %v2491_v43 = vmax.f32 %v886_v20, 0.0  ;;  %v888_v5 = vadd.f32 %v887_v33, %v835_v27 }
 0x23f   : > { %1064 = vrot.lane.b32.xlu0 %v2491_v43, %s1885_s29  ;;  %1070 = vrot.lane.b32.xlu1 %v2489_v42, %s1885_s29  ;;  %v1172_v8 = vpack.c.bf16 %v2491_v43, %v2483_v29  ;;  %v2499_v40 = vmax.f32 %v888_v5, 0.0 }
 0x243   : > { %1072 = vrot.lane.b32.xlu0 %v2499_v40, %s1885_s29  ;;  %902 = vrot.lane.b32.xlu1 %v2483_v29, %s1886_s14  ;;  %s3009_s29 = smov 16  }
 0x247   : > { %904 = vrot.lane.b32.xlu0 %v2491_v43, %s1886_s14  ;;  %910 = vrot.lane.b32.xlu1 %v2489_v42, %s1886_s14 }
 0x24b   : > { %900 = vrot.lane.b32.xlu0 %v2475_v30, %s1886_s14  ;;  %898 = vrot.lane.b32.xlu1 %v2469_v25, %s1886_s14 }
 0x24f   : > { %908 = vrot.lane.b32.xlu0 %v2481_v28, %s1886_s14  ;;  %906 = vrot.lane.b32.xlu1 %v2473_v63, %s1886_s14 }
 0x253   : > { %912 = vrot.lane.b32.xlu0 %v2499_v40, %s1886_s14  ;;  %998 = vrot.lane.b32.xlu1 %v2483_v29, %s3009_s29 }
 0x257   : > { %1000 = vrot.lane.b32.xlu0 %v2491_v43, %s3009_s29  ;;  %1006 = vrot.lane.b32.xlu1 %v2489_v42, %s3009_s29 }
 0x25b   : > { %996 = vrot.lane.b32.xlu0 %v2475_v30, %s3009_s29  ;;  %994 = vrot.lane.b32.xlu1 %v2469_v25, %s3009_s29 }
 0x25f   : > { %1004 = vrot.lane.b32.xlu0 %v2481_v28, %s3009_s29  ;;  %1002 = vrot.lane.b32.xlu1 %v2473_v63, %s3009_s29 }
 0x263   : > { %1032 = vrot.lane.b32.xlu0 %v2491_v43, %s1888_s17  ;;  %1030 = vrot.lane.b32.xlu1 %v2483_v29, %s1888_s17 }
 0x267   : > { %1008 = vrot.lane.b32.xlu0 %v2499_v40, %s3009_s29 }
 0x2a5   : > { %v1059_v6 = vpop.permute.xlu1 %1058 }
 0x2a9   : > { %v1061_v9 = vpop.permute.xlu0 %1060  ;;  %v1067_v12 = vpop.permute.xlu1 %1066 }
 0x2aa   : > { %v1074_v13 = vsel %vm598_vm3, %v1059_v6, %v1067_v12  ;;  %v1078_v46 = vsel %vm598_vm3, %v1067_v12, %v1059_v6 }
 0x2ab   : > { %v2542_v41 = vmul.f32 %v2144_v16, %v1074_v13  ;;  %v2551_v14 = vmul.f32 %v2154_v22, %v1078_v46  ;;  %v1199_v13 = vld [vmem:[%s2992_s4 + $0x8] sm:$0xff]  ;;  %v1198_v46 = vld [vmem:[%s2992_s4] sm:$0xff] }
 0x2ad   : > { %v1069_v47 = vpop.permute.xlu0 %1068  ;;  %1090 = vrot.lane.b32.xlu1 %v2542_v41, %s3009_s29  ;;  %v1063_v54 = vpop.permute.xlu1 %1062 }
 0x2ae   : > { %v1075_v56 = vsel %vm598_vm3, %v1061_v9, %v1069_v47  ;;  %v1079_v11 = vsel %vm598_vm3, %v1069_v47, %v1061_v9  ;;  %v1201_v47 = vld [vmem:[%s2992_s4 + $0x18] sm:$0xff] }
 0x2af   : > { %v2554_v10 = vmul.f32 %v2144_v16, %v1075_v56  ;;  %v2563_v18 = vmul.f32 %v2154_v22, %v1079_v11 }
 0x2b1   : > { %1092 = vrot.lane.b32.xlu0 %v2554_v10, %s3009_s29  ;;  %v1065_v15 = vpop.permute.xlu0 %1064  ;;  %1098 = vrot.lane.b32.xlu1 %v2551_v14, %s3009_s29  ;;  %v1071_v17 = vpop.permute.xlu1 %1070 }
 0x2b2   : > { %v1076_v39 = vsel %vm598_vm3, %v1063_v54, %v1071_v17 }
 0x2b3   : > { %v2600_v33 = vmul.f32 %v2144_v16, %v1076_v39 }
 0x2b5   : > { %1100 = vrot.lane.b32.xlu0 %v2563_v18, %s3009_s29  ;;  %v1073_v59 = vpop.permute.xlu0 %1072  ;;  %v903_v61 = vpop.permute.xlu1 %902 }
 0x2b6   : > { %v1077_v45 = vsel %vm598_vm3, %v1065_v15, %v1073_v59 }
 0x2b7   : > { %v2603_v5 = vmul.f32 %v2144_v16, %v1077_v45 }
 0x2b9   : > { %v905_v19 = vpop.permute.xlu0 %904  ;;  %v911_v21 = vpop.permute.xlu1 %910 }
 0x2ba   : > { %v916_v26 = vsel %vm435_vm7, %v903_v61, %v911_v21  ;;  %v920_v35 = vsel %vm435_vm7, %v911_v21, %v903_v61 }
 0x2bb   : > { %v926_v50 = vmul.f32 %v2211_v48, %v920_v35  ;;  %v927_v51 = vmul.f32 %v2214_v49, %v916_v26 }
 0x2bd   : > { %v901_v58 = vpop.permute.xlu0 %900  ;;  %v899_v60 = vpop.permute.xlu1 %898 }
 0x2c1   : > { %v909_v23 = vpop.permute.xlu0 %908  ;;  %v907_v24 = vpop.permute.xlu1 %906 }
 0x2c2   : > { %v919_v34 = vsel %vm435_vm7, %v909_v23, %v901_v58  ;;  %v918_v44 = vsel %vm435_vm7, %v907_v24, %v899_v60  ;;  %v915_v38 = vsel %vm435_vm7, %v901_v58, %v909_v23  ;;  %v914_v62 = vsel %vm435_vm7, %v899_v60, %v907_v24 }
 0x2c3   : > { %v924_v36 = vmul.f32 %v2211_v48, %v919_v34  ;;  %v922_v37 = vmul.f32 %v2211_v48, %v918_v44  ;;  %v925_v4 = vmul.f32 %v2214_v49, %v915_v38  ;;  %v923_v55 = vmul.f32 %v2214_v49, %v914_v62 }
 0x2c5   : > { %932 = vrot.lane.b32.xlu0 %v924_v36, %s3009_s29  ;;  %v913_v2 = vpop.permute.xlu0 %912  ;;  %930 = vrot.lane.b32.xlu1 %v922_v37, %s3009_s29  ;;  %v1167_v6 = vpack.c.bf16 %v925_v4, %v923_v55  ;;  %v1166_v9 = vpack.c.bf16 %v924_v36, %v922_v37  ;;  %v999_v56 = vpop.permute.xlu1 %998 }
 0x2c6   : > { %v917_v52 = vsel %vm435_vm7, %v905_v19, %v913_v2  ;;  %v921_v53 = vsel %vm435_vm7, %v913_v2, %v905_v19 }
 0x2c7   : > { %v928_v57 = vmul.f32 %v2211_v48, %v921_v53  ;;  %v929_v32 = vmul.f32 %v2214_v49, %v917_v52  ;;  %v1080_v48 = vsel %vm598_vm3, %v1071_v17, %v1063_v54  ;;  %v1081_v49 = vsel %vm598_vm3, %v1073_v59, %v1065_v15  ;;  %v1200_v54 = vld [vmem:[%s2992_s4 + $0x10] sm:$0xff] }
 0x2c8   : > { %v2614_v16 = vmul.f32 %v2154_v22, %v1080_v48  ;;  %v2617_v12 = vmul.f32 %v2154_v22, %v1081_v49  ;;  %v1728_v22 = vld [vmem:[%s2991_s3 + $0x4] ss:$12 sps:$4 sm:$0xff]  }
 0x2c9   : > { %v1168_v20 = vpack.c.bf16 %v928_v57, %v926_v50  ;;  %940 = vrot.lane.b32.xlu0 %v925_v4, %s3009_s29  ;;  %938 = vrot.lane.b32.xlu1 %v923_v55, %s3009_s29  ;;  %v1169_v27 = vpack.c.bf16 %v929_v32, %v927_v51  ;;  %v1001_v11 = vpop.permute.xlu0 %1000  ;;  %v1007_v15 = vpop.permute.xlu1 %1006 }
 0x2ca   : > { %1290 = vmatprep.mubr.bf16.mxu1 %v1728_v22 }
 0x2cb   : > { %1258 = vmatprep.subr.bf16.mxu1 %v1169_v27 }
 0x2cc   : > { %1259 = vmatpush1.bf16.msra.mxu1 %v1168_v20 }
 0x2cd   : > { %1096 = vrot.lane.b32.xlu0 %v2603_v5, %s3009_s29  ;;  %1094 = vrot.lane.b32.xlu1 %v2600_v33, %s3009_s29  ;;  %v997_v17 = vpop.permute.xlu0 %996  ;;  %v995_v59 = vpop.permute.xlu1 %994 }
 0x2ce   : > { %1260 = vmatprep.subr.bf16.mxu1 %v1167_v6 }
 0x2d0   : > { %1261 = vmatpush1.bf16.msra.mxu1 %v1166_v9 }
 0x2d1   : > { %1104 = vrot.lane.b32.xlu0 %v2617_v12, %s3009_s29  ;;  %1102 = vrot.lane.b32.xlu1 %v2614_v16, %s3009_s29  ;;  %v1005_v61 = vpop.permute.xlu0 %1004  ;;  %v1003_v19 = vpop.permute.xlu1 %1002 }
 0x2d5   : > { %1040 = vrot.lane.b32.xlu0 %v2499_v40, %s1888_s17  ;;  %1038 = vrot.lane.b32.xlu1 %v2489_v42, %s1888_s17  ;;  %v2678_v21 = vpop.permute.xlu0 %1032  ;;  %v2680_v58 = vpop.permute.xlu1 %1030 }
 0x2d9   : > { %1028 = vrot.lane.b32.xlu0 %v2475_v30, %s1888_s17  ;;  %934 = vrot.lane.b32.xlu1 %v926_v50, %s3009_s29  ;;  %v1009_v60 = vpop.permute.xlu0 %1008 }
 0x2da   : > { %v1017_v22 = vsel %vm468_vm8, %v1009_v60, %v1001_v11 }
 0x2dd   : > { %936 = vrot.lane.b32.xlu0 %v928_v57, %s3009_s29  ;;  %942 = vrot.lane.b32.xlu1 %v927_v51, %s3009_s29 }
 0x2e1   : > { %944 = vrot.lane.b32.xlu0 %v929_v32, %s3009_s29  ;;  %1026 = vrot.lane.b32.xlu1 %v2469_v25, %s1888_s17 }
 0x2e5   : > { %1036 = vrot.lane.b32.xlu0 %v2481_v28, %s1888_s17  ;;  %1034 = vrot.lane.b32.xlu1 %v2473_v63, %s1888_s17 }
 0x2e9   : > { %964 = vrot.lane.b32.xlu0 %v924_v36, %s1888_s17  ;;  %966 = vrot.lane.b32.xlu1 %v926_v50, %s1888_s17 }
 0x2ed   : > { %968 = vrot.lane.b32.xlu0 %v928_v57, %s1888_s17  ;;  %974 = vrot.lane.b32.xlu1 %v927_v51, %s1888_s17 }
 0x2f1   : > { %976 = vrot.lane.b32.xlu0 %v929_v32, %s1888_s17  ;;  %962 = vrot.lane.b32.xlu1 %v922_v37, %s1888_s17 }
 0x2f5   : > { %972 = vrot.lane.b32.xlu0 %v925_v4, %s1888_s17  ;;  %970 = vrot.lane.b32.xlu1 %v923_v55, %s1888_s17 }
 0x2f9   : > { %1124 = vrot.lane.b32.xlu0 %v2554_v10, %s1888_s17  ;;  %1126 = vrot.lane.b32.xlu1 %v2600_v33, %s1888_s17 }
 0x2fd   : > { %1128 = vrot.lane.b32.xlu0 %v2603_v5, %s1888_s17  ;;  %1134 = vrot.lane.b32.xlu1 %v2614_v16, %s1888_s17 }
 0x301   : > { %1136 = vrot.lane.b32.xlu0 %v2617_v12, %s1888_s17  ;;  %1122 = vrot.lane.b32.xlu1 %v2542_v41, %s1888_s17 }
 0x305   : > { %1132 = vrot.lane.b32.xlu0 %v2563_v18, %s1888_s17  ;;  %1130 = vrot.lane.b32.xlu1 %v2551_v14, %s1888_s17  ;;  %s2937_s17 = scalar_lea.hbm %s2997_s9, %s1646_s21 }
 0x309   : > { %1209 = vperm.xlu0 %1716, %v1199_v13   ;;  %1204 = vperm.xlu1 %1717, %v1198_v46   ;;  %v1013_v46 = vsel %vm468_vm8, %v1001_v11, %v1009_v60 }
 0x30d   : > { %1219 = vperm.xlu0 %1716, %v1201_v47   ;;  %1214 = vperm.xlu1 %1717, %v1200_v54   ;;  %v1012_v54 = vsel %vm468_vm8, %v999_v56, %v1007_v15 }
 0x31f   : > { %v1091_v23 = vpop.permute.xlu1 %1090 }
 0x323   : > { %v1093_v24 = vpop.permute.xlu0 %1092  ;;  %v1099_v34 = vpop.permute.xlu1 %1098 }
 0x324   : > { %v1110_v20 = vsel %vm468_vm8, %v1099_v34, %v1091_v23  ;;  %v1106_v27 = vsel %vm468_vm8, %v1091_v23, %v1099_v34  ;;  %v1016_v23 = vsel %vm468_vm8, %v1007_v15, %v999_v56  ;;  %v1014_v34 = vsel %vm468_vm8, %v1003_v19, %v995_v59 }
 0x325   : > { %v1114_v47 = vmul.f32 %v2043_v3, %v1110_v20  ;;  %v1010_v56 = vsel %vm468_vm8, %v995_v59, %v1003_v19 }
 0x327   : > { %v1101_v44 = vpop.permute.xlu0 %1100 }
 0x328   : > { %v1111_v2 = vsel %vm468_vm8, %v1101_v44, %v1093_v24  ;;  %v1107_v57 = vsel %vm468_vm8, %v1093_v24, %v1101_v44  ;;  %v1015_v24 = vsel %vm468_vm8, %v1005_v61, %v997_v17  ;;  %v1024_v44 = vmul.f32 %v2043_v3, %v1017_v22 }
 0x329   : > { %v1116_v48 = vmul.f32 %v2043_v3, %v1111_v2  ;;  %v1163_v13 = vpack.c.bf16 %v1107_v57, %v1106_v27  ;;  %v1022_v2 = vmul.f32 %v2043_v3, %v1016_v23  ;;  %v1020_v15 = vmul.f32 %v2043_v3, %v1015_v24 }
 0x337   : > { %v933_v26 = vpop.permute.xlu0 %932  ;;  %v931_v35 = vpop.permute.xlu1 %930 }
 0x33b   : > { %v941_v36 = vpop.permute.xlu0 %940  ;;  %v939_v37 = vpop.permute.xlu1 %938 }
 0x33c   : > { %v951_v59 = vsel %vm468_vm8, %v941_v36, %v933_v26  ;;  %v950_v19 = vsel %vm468_vm8, %v939_v37, %v931_v35 }
 0x33d   : > { %v956_v22 = vmul.f32 %v2043_v3, %v951_v59 }
 0x33f   : > { %v1097_v38 = vpop.permute.xlu0 %1096  ;;  %v1095_v62 = vpop.permute.xlu1 %1094 }
 0x343   : > { %v1105_v50 = vpop.permute.xlu0 %1104  ;;  %v1103_v51 = vpop.permute.xlu1 %1102 }
 0x344   : > { %v1109_v52 = vsel %vm468_vm8, %v1097_v38, %v1105_v50  ;;  %v1113_v53 = vsel %vm468_vm8, %v1105_v50, %v1097_v38  ;;  %v1108_v4 = vsel %vm468_vm8, %v1095_v62, %v1103_v51  ;;  %v1112_v55 = vsel %vm468_vm8, %v1103_v51, %v1095_v62 }
 0x345   : > { %v1120_v32 = vmul.f32 %v2043_v3, %v1113_v53  ;;  %v1118_v39 = vmul.f32 %v2043_v3, %v1112_v55  ;;  %v1165_v45 = vpack.c.bf16 %v1109_v52, %v1108_v4  ;;  %v1162_v38 = vpack.c.bf16 %v1116_v48, %v1114_v47 }
 0x346   : > { %v1161_v62 = vpack.c.bf16 %v1013_v46, %v1012_v54  ;;  %v1011_v50 = vsel %vm468_vm8, %v997_v17, %v1005_v61  ;;  %v1018_v51 = vmul.f32 %v2043_v3, %v1014_v34  ;;  %v1160_v52 = vpack.c.bf16 %v1024_v44, %v1022_v2 }
 0x347   : > { %v1164_v49 = vpack.c.bf16 %v1120_v32, %v1118_v39  ;;  %v2701_v6 = vpop.permute.xlu0 %1040  ;;  %1262 = vmatprep.subr.bf16.mxu1 %v1165_v45  ;;  %v2703_v9 = vpop.permute.xlu1 %1038  ;;  %v1159_v55 = vpack.c.bf16 %v1011_v50, %v1010_v56  ;;  %v947_v17 = vsel %vm468_vm8, %v933_v26, %v941_v36  ;;  %v946_v61 = vsel %vm468_vm8, %v931_v35, %v939_v37 }
 0x348   : > { %v1158_v57 = vpack.c.bf16 %v1020_v15, %v1018_v51  ;;  %v1049_v20 = vsel %vm501_vm9, %v2701_v6, %v2678_v21  ;;  %v1048_v35 = vsel %vm501_vm9, %v2703_v9, %v2680_v58  ;;  %v1155_v23 = vpack.c.bf16 %v947_v17, %v946_v61 }
 0x349   : > { %1263 = vmatpush1.bf16.msra.mxu1 %v1164_v49  ;;  %v1057_v24 = vmul.f32 %v2060_v7, %v1049_v20  ;;  %v1055_v34 = vmul.f32 %v2060_v7, %v1048_v35  ;;  %v1044_v50 = vsel %vm501_vm9, %v2680_v58, %v2703_v9 }
 0x34a   : > { %1264 = vmatprep.subr.bf16.mxu1 %v1163_v13  ;;  %v954_v13 = vmul.f32 %v2043_v3, %v950_v19 }
 0x34b   : > { %v1029_v11 = vpop.permute.xlu0 %1028  ;;  %v935_v60 = vpop.permute.xlu1 %934  ;;  %v1185_v51 = vpack.c.bf16 %v1057_v24, %v1055_v34  ;;  %v1176_v34 = vpack.c.bf16 %v2603_v5, %v2600_v33 }
 0x34d   : > { %1265 = vmatpush1.bf16.msra.mxu1 %v1162_v38 }
 0x34e   : > { %1266 = vmatprep.subr.bf16.mxu1 %v1161_v62 }
 0x34f   : > { %v937_v53 = vpop.permute.xlu0 %936  ;;  %v943_v4 = vpop.permute.xlu1 %942 }
 0x350   : > { %v952_v32 = vsel %vm468_vm8, %v943_v4, %v935_v60  ;;  %v948_v27 = vsel %vm468_vm8, %v935_v60, %v943_v4  ;;  %v1154_v60 = vpack.c.bf16 %v956_v22, %v954_v13 }
 0x351   : > { %1267 = vmatpush1.bf16.msra.mxu1 %v1160_v52  ;;  %v958_v36 = vmul.f32 %v2043_v3, %v952_v32 }
 0x352   : > { %1268 = vmatprep.subr.bf16.mxu1 %v1159_v55 }
 0x353   : > { %v945_v39 = vpop.permute.xlu0 %944  ;;  %v1027_v45 = vpop.permute.xlu1 %1026 }
 0x354   : > { %v949_v48 = vsel %vm468_vm8, %v937_v53, %v945_v39  ;;  %v953_v26 = vsel %vm468_vm8, %v945_v39, %v937_v53 }
 0x355   : > { %v960_v37 = vmul.f32 %v2043_v3, %v953_v26  ;;  %v1157_v49 = vpack.c.bf16 %v949_v48, %v948_v27  ;;  %1269 = vmatpush1.bf16.msra.mxu1 %v1158_v57  ;;  %v1045_v3 = vsel %vm501_vm9, %v2678_v21, %v2701_v6 }
 0x356   : > { %v1184_v52 = vpack.c.bf16 %v1045_v3, %v1044_v50 }
 0x357   : > { %v1156_v46 = vpack.c.bf16 %v960_v37, %v958_v36  ;;  %v1037_v47 = vpop.permute.xlu0 %1036  ;;  %1270 = vmatprep.subr.bf16.mxu1 %v1157_v49  ;;  %v1035_v54 = vpop.permute.xlu1 %1034 }
 0x358   : > { %v1047_v44 = vsel %vm501_vm9, %v1037_v47, %v1029_v11  ;;  %v1046_v38 = vsel %vm501_vm9, %v1035_v54, %v1027_v45  ;;  %v1043_v21 = vsel %vm501_vm9, %v1029_v11, %v1037_v47  ;;  %v1042_v6 = vsel %vm501_vm9, %v1027_v45, %v1035_v54 }
 0x359   : > { %1271 = vmatpush1.bf16.msra.mxu1 %v1156_v46  ;;  %v1053_v56 = vmul.f32 %v2060_v7, %v1047_v44  ;;  %v1051_v15 = vmul.f32 %v2060_v7, %v1046_v38  ;;  %v1182_v9 = vpack.c.bf16 %v1043_v21, %v1042_v6  ;;  %v1177_v54 = vpack.c.bf16 %v2617_v12, %v2614_v16 }
 0x35a   : > { %1272 = vmatprep.subr.bf16.mxu1 %v1155_v23  ;;  %v1175_v44 = vpack.c.bf16 %v2563_v18, %v2551_v14  ;;  %v1174_v16 = vpack.c.bf16 %v2554_v10, %v2542_v41  ;;  %v1173_v18 = vpack.c.bf16 %v2499_v40, %v2489_v42 }
 0x35b   : > { %v965_v62 = vpop.permute.xlu0 %964  ;;  %v967_v2 = vpop.permute.xlu1 %966  ;;  %v1183_v55 = vpack.c.bf16 %v1053_v56, %v1051_v15 }
 0x35d   : > { %1273 = vmatpush1.bf16.msra.mxu1 %v1154_v60 }
 0x35e   : > { %1274 = vmatprep.subr.bf16.mxu1 %v1185_v51  ;;  %v1171_v51 = vpack.c.bf16 %v2481_v28, %v2473_v63  ;;  %v1170_v63 = vpack.c.bf16 %v2475_v30, %v2469_v25  ;;  %v1730_v28 = vld [vmem:[%s2991_s3 + $0x1c] ss:$12 sps:$4 sm:$0xff]   ;;  %v1732_v25 = vld [vmem:[%s2991_s3 + $0x18] ss:$12 sps:$4 sm:$0xff]   ;;  %v1733_v30 = vld [vmem:[%s2991_s3 + $0x20] ss:$12 sps:$4 sm:$0xff]  }
 0x35f   : > { %v969_v53 = vpop.permute.xlu0 %968  ;;  %v975_v4 = vpop.permute.xlu1 %974 }
 0x360   : > { %v984_v58 = vsel %vm501_vm9, %v975_v4, %v967_v2  ;;  %v980_v19 = vsel %vm501_vm9, %v967_v2, %v975_v4 }
 0x361   : > { %1275 = vmatpush2.bf16.msra.mxu1 %v1184_v52  ;;  %v991_v59 = vmul.f32 %v2060_v7, %v984_v58 }
 0x362   : > { %1276 = vmatprep.subr.bf16.mxu1 %v1183_v55 }
 0x363   : > { %v977_v57 = vpop.permute.xlu0 %976  ;;  %v963_v32 = vpop.permute.xlu1 %962 }
 0x364   : > { %v985_v17 = vsel %vm501_vm9, %v977_v57, %v969_v53  ;;  %v981_v11 = vsel %vm501_vm9, %v969_v53, %v977_v57 }
 0x365   : > { %v993_v61 = vmul.f32 %v2060_v7, %v985_v17  ;;  %1277 = vmatpush2.bf16.msra.mxu1 %v1182_v9  ;;  %v1180_v27 = vpack.c.bf16 %v981_v11, %v980_v19 }
 0x367   : > { %v973_v39 = vpop.permute.xlu0 %972  ;;  %v971_v45 = vpop.permute.xlu1 %970  ;;  %v1181_v20 = vpack.c.bf16 %v993_v61, %v991_v59 }
 0x368   : > { %v983_v48 = vsel %vm501_vm9, %v973_v39, %v965_v62  ;;  %v982_v26 = vsel %vm501_vm9, %v971_v45, %v963_v32  ;;  %v979_v35 = vsel %vm501_vm9, %v965_v62, %v973_v39  ;;  %v978_v37 = vsel %vm501_vm9, %v963_v32, %v971_v45 }
 0x369   : > { %v989_v36 = vmul.f32 %v2060_v7, %v983_v48  ;;  %v987_v49 = vmul.f32 %v2060_v7, %v982_v26  ;;  %1278 = vmatprep.subr.bf16.mxu1 %v1181_v20  ;;  %v1178_v47 = vpack.c.bf16 %v979_v35, %v978_v37 }
 0x36a   : > { %1279 = vmatpush2.bf16.msra.mxu1 %v1180_v27 }
 0x36b   : > { %v1125_v22 = vpop.permute.xlu0 %1124  ;;  %v1127_v13 = vpop.permute.xlu1 %1126  ;;  %v1179_v46 = vpack.c.bf16 %v989_v36, %v987_v49 }
 0x36d   : > { %1280 = vmatprep.subr.bf16.mxu1 %v1179_v46 }
 0x36e   : > { %1281 = vmatpush2.bf16.msra.mxu1 %v1178_v47 }
 0x36f   : > { %v1129_v23 = vpop.permute.xlu0 %1128  ;;  %1282 = vmatprep.subr.bf16.mxu1 %v1177_v54  ;;  %v1135_v24 = vpop.permute.xlu1 %1134 }
 0x370   : > { %v1144_v38 = vsel %vm501_vm9, %v1135_v24, %v1127_v13  ;;  %v1140_v5 = vsel %vm501_vm9, %v1127_v13, %v1135_v24 }
 0x371   : > { %v1151_v62 = vmul.f32 %v2060_v7, %v1144_v38 }
 0x372   : > { %1283 = vmatpush2.bf16.msra.mxu1 %v1176_v34 }
 0x373   : > { %v1137_v60 = vpop.permute.xlu0 %1136  ;;  %1284 = vmatprep.subr.bf16.mxu1 %v1175_v44  ;;  %v1123_v3 = vpop.permute.xlu1 %1122 }
 0x374   : > { %v1145_v12 = vsel %vm501_vm9, %v1137_v60, %v1129_v23  ;;  %v1141_v33 = vsel %vm501_vm9, %v1129_v23, %v1137_v60 }
 0x375   : > { %v1153_v14 = vmul.f32 %v2060_v7, %v1145_v12  ;;  %v1188_v50 = vpack.c.bf16 %v1141_v33, %v1140_v5 }
 0x376   : > { %1285 = vmatpush2.bf16.msra.mxu1 %v1174_v16 }
 0x377   : > { %v1133_v2 = vpop.permute.xlu0 %1132  ;;  %1286 = vmatprep.subr.bf16.mxu1 %v1173_v18  ;;  %v1131_v41 = vpop.permute.xlu1 %1130  ;;  %v1189_v10 = vpack.c.bf16 %v1153_v14, %v1151_v62  ;;  %v1381_v14 = vld [vmem:[%s2993_s5 + $0x8] sm:$0xff] }
 0x378   : > { %v1143_v56 = vsel %vm501_vm9, %v1133_v2, %v1125_v22  ;;  %v1142_v15 = vsel %vm501_vm9, %v1131_v41, %v1123_v3  ;;  %v1139_v42 = vsel %vm501_vm9, %v1125_v22, %v1133_v2  ;;  %v1138_v52 = vsel %vm501_vm9, %v1123_v3, %v1131_v41  ;;  %v1380_v41 = vld [vmem:[%s2993_s5] sm:$0xff] }
 0x379   : > { %v1149_v40 = vmul.f32 %v2060_v7, %v1143_v56  ;;  %v1147_v53 = vmul.f32 %v2060_v7, %v1142_v15  ;;  %1323 = vmatprep.subr.bf16.mxu0 %v1189_v10  ;;  %v1186_v21 = vpack.c.bf16 %v1139_v42, %v1138_v52  ;;  %v1729_v7 = vld [vmem:[%s2991_s3 + $0x8] ss:$12 sps:$4 sm:$0xff]   ;;  %v1383_v52 = vld [vmem:[%s2993_s5 + $0x18] sm:$0xff] }
 0x37a   : > { %1287 = vmatpush2.bf16.msra.mxu1 %v1172_v8  ;;  %1324 = vmatpush1.bf16.msra.mxu0 %v1188_v50  ;;  %v1382_v50 = vld [vmem:[%s2993_s5 + $0x10] sm:$0xff] }
 0x37b   : > { %1288 = vmatprep.subr.bf16.mxu1 %v1171_v51  ;;  %v1187_v4 = vpack.c.bf16 %v1149_v40, %v1147_v53 }
 0x37d   : > { %1325 = vmatprep.subr.bf16.mxu0 %v1187_v4 }
 0x37e   : > { %1289 = vmatpush2.bf16.msra.mxu1 %v1170_v63  ;;  %1326 = vmatpush1.bf16.msra.mxu0 %v1186_v21 }
 0x381   : > { %1291 = vmatmul.mubr.bf16.vlgmr.msra.gmra.mxu1 %v1726_v1  ;;  %1634 = vmatmul.mubr.msk.bf16.vlgmr.msra.gmra.mxu0 %vm777_vm10, %v1729_v7 }
 0x382   : > { %1300 = vmatprep.mubr.bf16.mxu1 %v1730_v28  ;;  %1353 = vmatprep.mubr.bf16.mxu0 %v1889_v31 }
 0x384   : > { %v1205_v29 = vpop.permute.xlu1 %1204  ;;  %v1210_v9 = vpop.permute.xlu0 %1209 }
 0x388   : > { %v1215_v39 = vpop.permute.xlu1 %1214  ;;  %v1220_v22 = vpop.permute.xlu0 %1219 }
 0x389   : > { %1301 = vmatmul.mubr.bf16.gmra.mxu1 %v1732_v25  ;;  %1635 = vmatmul.mubr.msk.bf16.gmra.mxu0 %vm777_vm10, %v1733_v30 }
 0x441   : > { %v1292_v43 = vpop.f32.mrf.mxu1  ;;  %v1345_v8 = vpop.f32.mrf.mxu0 }
 0x442   : > { %v1293_v6 = vadd.f32 %v1292_v43, %v1205_v29 }
 0x443   : > { %v1294_v55 = vpop.f32.mrf.mxu1  ;;  %v1347_v58 = vpop.f32.mrf.mxu0 }
 0x444   : > { %v1295_v57 = vadd.f32 %v1294_v55, %v1205_v29  ;;  %v2849_v17 = vadd.f32 %v1345_v8, %v1293_v6 }
 0x445   : > { %v1296_v31 = vpop.f32.mrf.mxu1  ;;  %v1349_v32 = vpop.f32.mrf.mxu0 }
 0x446   : > { %v1297_v59 = vadd.f32 %v1296_v31, %v1210_v9  ;;  %v2851_v11 = vadd.f32 %v1347_v58, %v1295_v57  ;;  %v1410_v58 = vshrl.u32 %v368_v0, 7  ;;  %v1407_v0 = vld [vmem:[%s2995_s7 + $0x10] sm:$0xff] }
 0x447   : > { %v1298_v61 = vpop.f32.mrf.mxu1  ;;  %v1351_v19 = vpop.f32.mrf.mxu0 }
 0x448   : > { %v1364_v45 = vadd.f32 %v2851_v11, %v2849_v17  ;;  %v1299_v20 = vadd.f32 %v1298_v61, %v1210_v9  ;;  %v2855_v26 = vadd.f32 %v1349_v32, %v1297_v59  ;;  %v1402_v9 = vld [vmem:[#allocation5] sm:$0x1]  ;;  %v1411_v32 = vsub.s32 0, %v1410_v58  ;;  %v1406_v61 = vld [vmem:[%s2995_s7 + $0x8] sm:$0xff] }
 0x449   : > { %v1302_v27 = vpop.f32.mrf.mxu1  ;;  %v1355_v48 = vpop.f32.mrf.mxu0 }
 0x44a   : > { %v1303_v35 = vadd.f32 %v1302_v27, %v1215_v39  ;;  %v2857_v36 = vadd.f32 %v1351_v19, %v1299_v20  ;;  %1365 = vadd.xlane.f32.xlu1 %v1364_v45  ;;  %v1405_v19 = vld [vmem:[%s2995_s7] sm:$0xff]  ;;  %v1408_v45 = vld [vmem:[%s2995_s7 + $0x18] sm:$0xff] }
 0x44b   : > { %v1304_v37 = vpop.f32.mrf.mxu1  ;;  %v1357_v49 = vpop.f32.mrf.mxu0 }
 0x44c   : > { %v1367_v13 = vadd.f32 %v2857_v36, %v2855_v26  ;;  %v1305_v46 = vadd.f32 %v1304_v37, %v1215_v39  ;;  %v2861_v23 = vadd.f32 %v1355_v48, %v1303_v35 }
 0x44d   : > { %v1306_v47 = vpop.f32.mrf.mxu1  ;;  %v1359_v54 = vpop.f32.mrf.mxu0 }
 0x44e   : > { %v1307_v24 = vadd.f32 %v1306_v47, %v1220_v22  ;;  %v2863_v34 = vadd.f32 %v1357_v49, %v1305_v46  ;;  %1368 = vadd.xlane.f32.xlu0 %v1367_v13  ;;  %v1430_v46 = vld [vmem:[%s2996_s8 + $0x8] sm:$0xff]  ;;  %v1429_v47 = vld [vmem:[%s2996_s8] sm:$0xff] }
 0x44f   : > { %v1308_v44 = vpop.f32.mrf.mxu1  ;;  %v1361_v3 = vpop.f32.mrf.mxu0 }
 0x450   : > { %v1370_v38 = vadd.f32 %v2863_v34, %v2861_v23  ;;  %v1309_v60 = vadd.f32 %v1308_v44, %v1220_v22  ;;  %v2867_v16 = vadd.f32 %v1359_v54, %v1307_v24 }
 0x452   : > { %v2869_v12 = vadd.f32 %v1361_v3, %v1309_v60  ;;  %1371 = vadd.xlane.f32.xlu0 %v1370_v38  ;;  %v1432_v60 = vld [vmem:[%s2996_s8 + $0x18] sm:$0xff]  ;;  %v1431_v3 = vld [vmem:[%s2996_s8 + $0x10] sm:$0xff] }
 0x454   : > { %v1373_v62 = vadd.f32 %v2869_v12, %v2867_v16 }
 0x456   : > { %1374 = vadd.xlane.f32.xlu1 %v1373_v62 }
 0x4d3   : > { %v1366_v33 = vpop.xlane.xlu1 %1365 }
 0x4d4   : > { %v1376_v5 = vmul.f32 0.00390625, %v1366_v33 }
 0x4d6   : > { %v1384_v15 = vmul.f32 %v1380_v41, %v1376_v5 }
 0x4d7   : > { %v1369_v18 = vpop.xlane.xlu0 %1368 }
 0x4d8   : > { %v1377_v2 = vmul.f32 0.00390625, %v1369_v18  ;;  %v1389_v4 = vsel %vm1388_vm11, %v1384_v15, 0.0 }
 0x4da   : > { %v1385_v10 = vmul.f32 %v1381_v14, %v1377_v2 }
 0x4db   : > { %v1372_v56 = vpop.xlane.xlu0 %1371 }
 0x4dc   : > { %v1378_v51 = vmul.f32 0.00390625, %v1372_v56  ;;  %v1390_v42 = vsel %vm1388_vm11, %v1385_v10, 0.0 }
 0x4dd   : > { %v1391_v1 = vadd.f32 %v1390_v42, %v1389_v4 }
 0x4de   : > { %v1386_v40 = vmul.f32 %v1382_v50, %v1378_v51 }
 0x4df   : > { %v1375_v53 = vpop.xlane.xlu1 %1374 }
 0x4e0   : > { %v1392_v21 = vsel %vm1388_vm11, %v1386_v40, 0.0  ;;  %v1379_v63 = vmul.f32 0.00390625, %v1375_v53 }
 0x4e1   : > { %v1393_v28 = vadd.f32 %v1392_v21, %v1391_v1 }
 0x4e2   : > { %v1387_v7 = vmul.f32 %v1383_v52, %v1379_v63 }
 0x4e4   : > { %v1394_v25 = vsel %vm1388_vm11, %v1387_v7, 0.0 }
 0x4e5   : > { %v1395_v30 = vadd.f32 %v1394_v25, %v1393_v28 }
 0x4e7   : > { %v1396_v29 = vrot.slane %v1395_v30, 4 }
 0x4e9   : > { %v1397_v43 = vadd.f32 %v1396_v29, %v1395_v30 }
 0x4eb   : > { %v1398_v8 = vrot.slane %v1397_v43, 2 }
 0x4ed   : > { %v1399_v6 = vadd.f32 %v1398_v8, %v1397_v43  ;;  %v1750_v8 = vld [vmem:[%s2040_s28 + $0x10] sm:$0xff] }
 0x4ef   : > { %v1400_v55 = vrot.slane %v1399_v6, 1 }
 0x4f1   : > { %v1401_v57 = vadd.f32 %v1400_v55, %v1399_v6  ;;  %v1751_v55 = vld [vmem:[%s2040_s28 + $0x18] sm:$0xff] }
 0x4f3   : > { %v1403_v31 = vadd.f32 %v1402_v9, %v1401_v57  ;;  %v1752_v9 = vld [vmem:[%s2040_s28] sm:$0xff] }
 0x4f5   : > { %v1404_v59 = vmax.f32 %v1403_v31, 0.0  ;;  %v1753_v31 = vld [vmem:[%s2040_s28 + $0x8] sm:$0xff] }
 0x4f7   : > { %v1412_v39 = vrot.slane %v1404_v59, %v1411_v32 }
 0x4f9   : > { %v1414_v20 = vmul.f32 %v1412_v39, %v1406_v61  ;;  %v1413_v27 = vmul.f32 %v1412_v39, %v1405_v19  ;;  %v1416_v37 = vmul.f32 %v1412_v39, %v1408_v45  ;;  %v1415_v49 = vmul.f32 %v1412_v39, %v1407_v0  ;;  %v1754_v19 = vld [vmem:[%s2040_s28 + $0x20] sm:$0xff]  ;;  %v1755_v45 = vld [vmem:[%s2040_s28 + $0x28] sm:$0xff] }
 0x4fb   : > { %v1420_v48 = vsel %vm1388_vm11, %v1414_v20, 0.0  ;;  %v1417_v35 = vsel %vm1388_vm11, %v1413_v27, 0.0  ;;  %v1426_v22 = vsel %vm1388_vm11, %v1416_v37, 0.0  ;;  %v1423_v13 = vsel %vm1388_vm11, %v1415_v49, 0.0  ;;  %v1756_v20 = vld [vmem:[%s2040_s28 + $0x30] sm:$0xff] }
 0x4fc   : > { %1421 = vadd.xlane.f32.xlu1 %v1420_v48  ;;  %1418 = vadd.xlane.f32.xlu0 %v1417_v35 }
 0x500   : > { %1427 = vadd.xlane.f32.xlu1 %v1426_v22  ;;  %1424 = vadd.xlane.f32.xlu0 %v1423_v13 }
 0x585   : > { %v1422_v54 = vpop.xlane.xlu1 %1421  ;;  %v1419_v24 = vpop.xlane.xlu0 %1418 }
 0x586   : > { %v1434_v44 = vadd.f32 %v1430_v46, %v1422_v54  ;;  %v1433_v38 = vadd.f32 %v1429_v47, %v1419_v24 }
 0x588   : > { %v1637_v62 = vmul.f32 -1.442695, %v1434_v44  ;;  %v1636_v33 = vmul.f32 -1.442695, %v1433_v38 }
 0x589   : > { %v1428_v14 = vpop.xlane.xlu1 %1427  ;;  %v1425_v18 = vpop.xlane.xlu0 %1424 }
 0x58a   : > { %1734 = vpow2.f32 %v1637_v62  ;;  %v1436_v5 = vadd.f32 %v1432_v60, %v1428_v14  ;;  %v1435_v2 = vadd.f32 %v1431_v3, %v1425_v18 }
 0x58b   : > { %1736 = vpow2.f32 %v1636_v33 }
 0x58c   : > { %v1639_v41 = vmul.f32 -1.442695, %v1436_v5  ;;  %v1638_v10 = vmul.f32 -1.442695, %v1435_v2 }
 0x58e   : > { %1738 = vpow2.f32 %v1639_v41 }
 0x58f   : > { %1740 = vpow2.f32 %v1638_v10 }
 0x597   : > { %v1735_v50 = vpop.eup %1734 }
 0x598   : > { %v1737_v56 = vpop.eup %1736  ;;  %v1450_v15 = vadd.f32 1.0, %v1735_v50 }
 0x599   : > { %v1449_v51 = vadd.f32 1.0, %v1737_v56 }
 0x59a   : > { %1742 = vrcp.f32 %v1450_v15 }
 0x59b   : > { %v1739_v42 = vpop.eup %1738  ;;  %1744 = vrcp.f32 %v1449_v51 }
 0x59c   : > { %v1741_v40 = vpop.eup %1740  ;;  %v1452_v52 = vadd.f32 1.0, %v1739_v42 }
 0x59d   : > { %v1451_v53 = vadd.f32 1.0, %v1741_v40 }
 0x59e   : > { %1746 = vrcp.f32 %v1452_v52 }
 0x59f   : > { %1748 = vrcp.f32 %v1451_v53 }
 0x5a7   : > { %v1743_v4 = vpop.eup %1742 }
 0x5a8   : > { %v1745_v21 = vpop.eup %1744  ;;  %1468 = vperm.xlu1 %1717, %v1743_v4  }
 0x5a9   : > { %1463 = vperm.xlu0 %1716, %v1745_v21  }
 0x5ab   : > { %v1747_v63 = vpop.eup %1746 }
 0x5ac   : > { %v1749_v1 = vpop.eup %1748 }
 0x5ad   : > { %1478 = vperm.xlu0 %1716, %v1747_v63   ;;  %1473 = vperm.xlu1 %1717, %v1749_v1  }
 0x623   : > { %v1469_v7 = vpop.permute.xlu1 %1468 }
 0x624   : > { %v1483_v28 = vmul.f32 %v1469_v7, %v2855_v26  ;;  %v1484_v25 = vmul.f32 %v1469_v7, %v2857_v36  ;;  %v1464_v30 = vpop.permute.xlu0 %1463 }
 0x625   : > { %v1481_v29 = vmul.f32 %v1464_v30, %v2849_v17  ;;  %v1482_v43 = vmul.f32 %v1464_v30, %v2851_v11 }
 0x626   : > { %v1491_v6 = vadd.f32 %v1750_v8, %v1483_v28  ;;  %v1492_v58 = vadd.f32 %v1751_v55, %v1484_v25 }
 0x627   : > { %v1489_v57 = vadd.f32 %v1752_v9, %v1481_v29  ;;  %v1490_v32 = vadd.f32 %v1753_v31, %v1482_v43 }
 0x628   : > { %1499 = vst [vmem:[%s353_s24 + $0x10] sm:$0xff] %v1491_v6  ;;  %1500 = vst [vmem:[%s353_s24 + $0x18] sm:$0xff] %v1492_v58  ;;  %v1474_v26 = vpop.permute.xlu1 %1473  ;;  %v1479_v17 = vpop.permute.xlu0 %1478 }
 0x629   : > { %1497 = vst [vmem:[%s353_s24] sm:$0xff] %v1489_v57  ;;  %1498 = vst [vmem:[%s353_s24 + $0x8] sm:$0xff] %v1490_v32  ;;  %v1485_v11 = vmul.f32 %v1474_v26, %v2861_v23  ;;  %v1486_v36 = vmul.f32 %v1474_v26, %v2863_v34  ;;  %v1487_v59 = vmul.f32 %v1479_v17, %v2867_v16  ;;  %v1757_v23 = vld [vmem:[%s2040_s28 + $0x38] sm:$0xff]  ;;  %s1814_s28 = sshll.u32 %s1890_s25, 4  ;;  %s1815_s28 = int_to_ptr.vmem [resolvable:$false] %s1814_s28 }
 0x62a   : > { %v1488_v61 = vmul.f32 %v1479_v17, %v2869_v12  ;;  %s1816_s23 = scalar_lea.vmem %s1815_s28, 2048  ;;  %p1817_p1 = scmp.lt.s32.totalorder %s2943_s26, %s1815_s28 }
 0x62b   : > { %v1493_v39 = vadd.f32 %v1754_v19, %v1485_v11  ;;  %v1494_v0 = vadd.f32 %v1755_v45, %v1486_v36  ;;  %v1495_v27 = vadd.f32 %v1756_v20, %v1487_v59  ;;  %p1818_p3 = scmp.lt.s32.totalorder %s1816_s23, %s1810_s22 }
 0x62c   : > { %v1496_v48 = vadd.f32 %v1757_v23, %v1488_v61 }
 0x62d   : > { %1501 = vst [vmem:[%s353_s24 + $0x20] sm:$0xff] %v1493_v39  ;;  %1502 = vst [vmem:[%s353_s24 + $0x28] sm:$0xff] %v1494_v0  ;;  %p1819_p2 = por %p1818_p3, %p1817_p1 }
 0x62e   : > { %1503 = vst [vmem:[%s353_s24 + $0x30] sm:$0xff] %v1495_v27  ;;  %1504 = vst [vmem:[%s353_s24 + $0x38] sm:$0xff] %v1496_v48 }
 0x62f   : > { %p1820_p4 = pnand %p1819_p2, %p1813_p0 }
 0x631   : > { %1823 = shalt.err (!%p1820_p4)
}
 0x632   : > { %s1824_s27 = scalar_lea.hbm %s2937_s17, 1024  ;;  %s1828_s13 = scalar_lea.hbm %s2997_s9, 2048 }
 0x633   : > { %p1825_p7 = scmp.ne.s32.totalorder %s2937_s17, %s1824_s27  ;;  %p1829_p9 = scmp.lt.s32.totalorder %s2937_s17, %s2997_s9 }
 0x634   : > { %p1830_p11 = scmp.lt.s32.totalorder %s1828_s13, %s1824_s27 }
 0x635   : > { %p1826_p13 = pnand %p1825_p7, %p1980_p5 }
 0x636   : > { %p1831_p10 = por %p1830_p11, %p1829_p9 }
 0x637   : > { %p1827_p8 = pneg %p1826_p13 }
 0x639   : > { %p1832_p12 = pnand %p1831_p10, %p1827_p8 }
 0x63b   : > { %1835 = shalt.err (!%p1832_p12)
}
 0x63c   : > { %s1891_s22 = smov 256  }
 0x63d   : > { %1655 = dma.vmem_to_hbm [thread:$0]  (%p1980_p5), %s2943_s26, 1024, %s2937_s17, %s2947_s16, %s1891_s22, %s1891_s22, %s3009_s29  }
 0x63e PF: > { %p1672_p0 = scmp.ge.s32.totalorder %s1878_s12, 2  ;;  %s1534_s28 = sand.u32 1, %s1866_s30  }
 0x63f   : > { %s1535_s23 = scalar_lea.sflag [#allocation4], %s1534_s28 }
 0x640   : > { %p1665_p1 = pnand %p1672_p0, %p1984_p6 }
 0x642   : > { %p1666_p3 = pneg %p1665_p1 }
 0x644   : > { %1861 = dma.done.wait (%p1666_p3), %s1535_s23, 1024  }
 0x645   : > { %1863 = vsyncadd (%p1666_p3), %s1535_s23, 4294966272  ;;  %p21_p2 = scmp.ge.s32.totalorder %s1967_s15, 4   ;;  %s3010_s30 = smov %s1870_s10 }
 0x646   : > { %s3011_s10 = smov %s1874_s11  ;;  %s3012_s11 = smov %s1978_s18 }
 0x647   : > { %s3013_s12 = smov %s1967_s15  ;;  %23 = sbr.rel (!%p21_p2) target bundleno = 5 (0x5), region = 100 }
 0x64c   :  { %1540 = vsyncpa [#allocation3], 1 }
 0x64d   :  { %1542 = vsyncpa [#allocation3 + $0x1], 1 }
 0x64e   :  { %1543 = vsyncpa [#allocation6], 1 }
 0x64f   :  { %1544 = vsyncpa [#allocation4], 1 }
 0x650   :  { %1546 = vsyncpa [#allocation4 + $0x1], 1 }

</bundles_post_ra>
